<compile_context>
chip_gen: v7x
topology: tpu7x:2x2x1
jax: 0.10.0
libtpu: 0.0.40
codegen_flags: <defaults>
</compile_context>

<pallas_src>
import functools
import math

import jax
import jax.numpy as jnp
from jax.experimental import pallas as pl
from jax.experimental.pallas import tpu as pltpu


def transformer_layer_kernel(
    q_ref, k_ref, v_ref,                         # (1, TQ, D) f32, (1, S, D) bf16, (1, S, D) bf16
    wk_ref, wv_ref, wo_ref, w1_ref, w2_ref,      # bf16 weights, whole-array VMEM
    vecs_ref,                                    # (8, D) f32: bk, bv, bo, ln1g, ln1b, b2, ln2g, ln2b
    b1_ref,                                      # (1, d_ff) f32
    o_ref,                                       # (1, TQ, D)
    kt_scr, v_scr, q_scr, attn_scr,              # bf16 scratch
    *, n_heads, d_k, mask_k, zero_pad, apply_pos, share_qk, exp_bf16, eps=1e-5,
):
    TQ = q_ref.shape[1]
    S = k_ref.shape[1]
    t = pl.program_id(1)
    row_off = t * TQ
    scale = 1.0 / math.sqrt(d_k)
    bf16 = jnp.bfloat16
    f32 = jnp.float32

    bk, bv, bo = vecs_ref[0:1, :], vecs_ref[1:2, :], vecs_ref[2:3, :]
    ln1g, ln1b = vecs_ref[3:4, :], vecs_ref[4:5, :]
    b2 = vecs_ref[5:6, :]
    ln2g, ln2b = vecs_ref[6:7, :], vecs_ref[7:8, :]

    # K / V projections are computed once per batch element (at q-tile 0), in
    # S-chunks, and written straight into bf16 VMEM scratch.
    CHUNK = 512
    n_chunks = (S + CHUNK - 1) // CHUNK

    def project_kv(include_q):
        for c in range(n_chunks):
            r0 = c * CHUNK
            r1 = min(S, r0 + CHUNK)
            kp = jnp.dot(k_ref[0, r0:r1, :], wk_ref[...],
                         preferred_element_type=f32) + bk              # (rows, D) f32
            kt_scr[:, r0:r1] = jnp.transpose(kp).astype(bf16)
            if include_q:
                # query is key: reuse the shared k_linear projection for q.
                q_scr[r0:r1, :] = (kp * scale).astype(bf16)
            v_scr[r0:r1, :] = (jnp.dot(v_ref[0, r0:r1, :], wv_ref[...],
                                       preferred_element_type=f32) + bv).astype(bf16)

    if share_qk:
        # True self-attention and a single q-tile: one shared projection pass.
        project_kv(include_q=True)
    else:
        @pl.when(t == 0)
        def _():
            project_kv(include_q=False)

        q_proj = jnp.dot(q_ref[0].astype(bf16), wk_ref[...],
                         preferred_element_type=f32) + bk              # (TQ, D) f32
        q_scr[...] = (q_proj * scale).astype(bf16)

    # Causal mask for this q-tile: allowed[i, j] = (j < (row_off + i) + mask_k).
    row = row_off + jax.lax.broadcasted_iota(jnp.int32, (TQ, S), 0)
    col = jax.lax.broadcasted_iota(jnp.int32, (TQ, S), 1)
    allowed = col < (row + mask_k)

    # Per-head attention: only d_k-wide ref slices are loaded, and each head's
    # output is written into columns of attn_scr so a single full-width
    # (TQ, D) @ (D, D) out_proj matmul runs after the loop.
    for h in range(n_heads):
        lo = h * d_k
        s = jnp.dot(q_scr[:, lo:lo + d_k], kt_scr[lo:lo + d_k, :],
                    preferred_element_type=f32)                        # (TQ, S) f32
        s = jnp.where(allowed, s, -1e32)
        m = jnp.max(s, axis=-1, keepdims=True)
        if exp_bf16:
            e = jnp.exp((s - m).astype(bf16))                          # bf16 EUP (v6e/v7x)
            l = jnp.sum(e.astype(f32), axis=-1, keepdims=True)         # f32 row sum
            p = e * pl.reciprocal(l, approx=True).astype(bf16)
        else:
            e = jnp.exp(s - m)                                         # f32 EUP (v5e)
            l = jnp.sum(e, axis=-1, keepdims=True)
            p = (e * pl.reciprocal(l, approx=True)).astype(bf16)
        ov = jnp.dot(p, v_scr[:, lo:lo + d_k], preferred_element_type=f32)  # (TQ, d_k)
        attn_scr[:, lo:lo + d_k] = ov.astype(bf16)

    attn = jnp.dot(attn_scr[...], wo_ref[...], preferred_element_type=f32)  # (TQ, D)

    if zero_pad:
        # mask == 0: row 0 of the post-softmax probabilities is zeroed in the
        # reference, equivalent to zeroing row 0 of the (pre-bias) attention output.
        qrow = row_off + jax.lax.broadcasted_iota(jnp.int32, (TQ, 1), 0)
        attn = jnp.where(qrow > 0, attn, 0.0)

    attn_out = attn + bo

    # Residual + LayerNorm 1 (f32).
    x = q_ref[0] + attn_out
    mu = jnp.mean(x, axis=-1, keepdims=True)
    var = jnp.mean((x - mu) ** 2, axis=-1, keepdims=True)
    x = (x - mu) * jax.lax.rsqrt(var + eps) * ln1g + ln1b

    if apply_pos:
        h1 = jnp.dot(x.astype(bf16), w1_ref[...],
                     preferred_element_type=f32) + b1_ref[...]
        h1 = jnp.maximum(h1, 0.0)
        ff = jnp.dot(h1.astype(bf16), w2_ref[...],
                     preferred_element_type=f32) + b2
        x = x + ff
        mu = jnp.mean(x, axis=-1, keepdims=True)
        var = jnp.mean((x - mu) ** 2, axis=-1, keepdims=True)
        x = (x - mu) * jax.lax.rsqrt(var + eps) * ln2g + ln2b

    o_ref[0] = x.astype(o_ref.dtype)


def _tpu_generation():
    """Best-effort TPU generation: 5 (v5e/v5p), 6 (v6e), 7 (v7x)."""
    try:
        kind = jax.devices()[0].device_kind.lower()
        for g in (7, 6, 5, 4):
            if f"v{g}" in kind:
                return g
    except Exception:
        pass
    return 6


def _vmem_limit_bytes(S, TQ, D, F, gen):
    """Rough per-generation VMEM budget for the kernel, with 2x headroom."""
    f32b, bf16b = 4, 2
    est = 0
    est += 2 * 2 * TQ * D * f32b                 # q tile + output tile, double-buffered
    est += 2 * 2 * S * D * bf16b                 # bf16 key / values blocks, double-buffered
    est += (3 * D * D + 2 * D * F) * bf16b       # weights, single-buffered
    est += (8 * D + F) * f32b                    # packed biases/LN params + b1
    est += (2 * S * D + 2 * TQ * D) * bf16b      # K^T / V / q / attn scratch
    est += 4 * TQ * S * f32b + 2 * TQ * F * f32b + 8 * TQ * D * f32b  # live intermediates
    # v7x has only 64 MiB VMEM per core -> leave headroom for Mosaic internals;
    # v5e/v6e have 128 MiB, so don't artificially cap at 64 MiB.
    cap = (56 << 20) if gen >= 7 else (100 << 20)
    return int(min(max(2 * est, 32 << 20), cap))


def transformer_layer(mask, query, key, values, params, *, n_heads, apply_pos=True,
                      q_tile=None, out_dtype=jnp.float32):
    """mask: python int (0 or 1), as in the PyTorch module's forward."""
    B, S, D = query.shape
    d_ff = params["w1"].shape[1]
    d_k = D // n_heads
    zero_pad = (mask == 0)
    gen = _tpu_generation()

    if q_tile is None:
        # 256-row q-tiles feed the 256x256 MXUs on v6e/v7x; v5e's MXU is 128x128
        # so 128 halves the (TQ, S) softmax intermediates at no matmul cost.
        pref = 256 if gen >= 6 else 128
        if S % pref == 0:
            q_tile = pref
        elif S % 128 == 0:
            q_tile = 128
        else:
            q_tile = S
    TQ = min(q_tile, S)
    assert S % TQ == 0, "q_tile must divide the sequence length"
    nq = S // TQ
    share_qk = (query is key) and (nq == 1)

    bf16 = jnp.bfloat16
    # Key / values are only ever consumed as bf16: cast in the wrapper so the
    # full-sequence HBM->VMEM DMAs and double-buffered VMEM blocks are halved.
    key_b = key.astype(bf16)
    values_b = values.astype(bf16)
    wk = params["wk"].astype(bf16)
    wv = params["wv"].astype(bf16)
    wo = params["wo"].astype(bf16)
    w1 = params["w1"].astype(bf16)
    w2 = params["w2"].astype(bf16)
    # Pack all (1, D)-shaped params into one (8, D) VMEM block (one DMA instead of 8).
    vecs = jnp.concatenate(
        [params["bk"], params["bv"], params["bo"],
         params["ln1_g"], params["ln1_b"], params["b2"],
         params["ln2_g"], params["ln2_b"]], axis=0).astype(jnp.float32)
    b1 = params["b1"].astype(jnp.float32)

    kernel = functools.partial(
        transformer_layer_kernel,
        n_heads=n_heads, d_k=d_k, mask_k=int(mask),
        zero_pad=zero_pad, apply_pos=apply_pos, share_qk=share_qk,
        exp_bf16=(gen >= 6))   # v5e has no bf16 EUP -> keep softmax exp in f32 there

    # Weights / packed biases: whole-array, single-buffered VMEM operands
    # (constant across the grid -> no double buffering, no per-step DMA).
    vmem_whole = pl.BlockSpec(memory_space=pltpu.MemorySpace.VMEM)

    in_specs = [
        pl.BlockSpec((1, TQ, D), lambda b, t: (b, t, 0)),   # query q-tile (f32)
        pl.BlockSpec((1, S, D), lambda b, t: (b, 0, 0)),    # key, full sequence (bf16)
        pl.BlockSpec((1, S, D), lambda b, t: (b, 0, 0)),    # values, full sequence (bf16)
        vmem_whole, vmem_whole, vmem_whole,                 # wk, wv, wo
        vmem_whole, vmem_whole,                             # w1, w2
        vmem_whole,                                         # packed biases / LN params
        vmem_whole,                                         # b1
    ]
    out_spec = pl.BlockSpec((1, TQ, D), lambda b, t: (b, t, 0))

    scratch_shapes = [
        pltpu.VMEM((D, S), bf16),    # cached K projection, pre-transposed
        pltpu.VMEM((S, D), bf16),    # cached V projection
        pltpu.VMEM((TQ, D), bf16),   # scaled q projection for this q-tile
        pltpu.VMEM((TQ, D), bf16),   # per-head attention outputs (out_proj input)
    ]

    return pl.pallas_call(
        kernel,
        out_shape=jax.ShapeDtypeStruct((B, S, D), out_dtype),
        grid_spec=pltpu.PrefetchScalarGridSpec(
            num_scalar_prefetch=0,
            grid=(B, nq),
            in_specs=in_specs,
            out_specs=out_spec,
            scratch_shapes=scratch_shapes,
        ),
        compiler_params=pltpu.CompilerParams(
            # K/V projections are cached in scratch at q-tile 0 and reused for the
            # remaining tiles of the same batch element, so the q-tile axis must be
            # "arbitrary"; the batch axis is megacore-parallel.
            dimension_semantics=("parallel", "arbitrary"),
            vmem_limit_bytes=_vmem_limit_bytes(S, TQ, D, d_ff, gen),
        ),
    )(query, key_b, values_b, wk, wv, wo, w1, w2, vecs, b1)


def transformer_layer_ref(mask, query, key, values, params, *, n_heads, apply_pos=True,
                          matmul_dtype=jnp.float32):
    """Pure-JAX reference (mirrors the PyTorch forward).

    matmul_dtype=jnp.bfloat16 mirrors the kernel's bf16-operand / f32-accumulate
    matmuls; jnp.float32 is the exact module semantics.
    """
    B, S, D = query.shape
    d_k = D // n_heads
    eps = 1e-5

    def mm(a, b):
        return jnp.einsum("...ij,jk->...ik", a.astype(matmul_dtype), b.astype(matmul_dtype),
                          preferred_element_type=jnp.float32)

    k_proj = mm(key, params["wk"]) + params["bk"]
    q_proj = mm(query, params["wk"]) + params["bk"]          # kq_same=True
    v_proj = mm(values, params["wv"]) + params["bv"]

    def split(x):
        return x.reshape(B, S, n_heads, d_k).transpose(0, 2, 1, 3)   # (B,H,S,dk)

    scale = 1.0 / math.sqrt(d_k)
    qh = split(q_proj * scale).astype(matmul_dtype)
    kh = split(k_proj).astype(matmul_dtype)
    vh = split(v_proj).astype(matmul_dtype)

    scores = jnp.einsum("bhqd,bhkd->bhqk", qh, kh, preferred_element_type=jnp.float32)
    row = jnp.arange(S)[:, None]
    col = jnp.arange(S)[None, :]
    allowed = col < (row + mask)
    scores = jnp.where(allowed[None, None], scores, -1e32)
    p = jax.nn.softmax(scores, axis=-1)
    if mask == 0:
        p = p.at[:, :, 0, :].set(0.0)
    attn = jnp.einsum("bhqk,bhkd->bhqd", p.astype(matmul_dtype), vh,
                      preferred_element_type=jnp.float32)
    attn = attn.transpose(0, 2, 1, 3).reshape(B, S, D)
    attn_out = mm(attn, params["wo"]) + params["bo"]

    def layer_norm(x, g, b):
        mu = jnp.mean(x, axis=-1, keepdims=True)
        var = jnp.mean((x - mu) ** 2, axis=-1, keepdims=True)
        return (x - mu) * jax.lax.rsqrt(var + eps) * g + b

    x = layer_norm(query + attn_out, params["ln1_g"], params["ln1_b"])
    if apply_pos:
        h1 = jnp.maximum(mm(x, params["w1"]) + params["b1"], 0.0)
        ff = mm(h1, params["w2"]) + params["b2"]
        x = layer_norm(x + ff, params["ln2_g"], params["ln2_b"])
    return x


if __name__ == "__main__":
    B, S, D, H, F = 2, 8, 32, 4, 64  # batch, seq, d_model, n_heads, d_ff
    key = jax.random.PRNGKey(0)
    ks = jax.random.split(key, 9)

    def xavier(k, shape):
        bound = math.sqrt(6.0 / (shape[0] + shape[1]))
        return jax.random.uniform(k, shape, jnp.float32, -bound, bound)

    params = {
        "wk": xavier(ks[0], (D, D)), "bk": jnp.zeros((1, D), jnp.float32),
        "wv": xavier(ks[1], (D, D)), "bv": jnp.zeros((1, D), jnp.float32),
        "wo": xavier(ks[2], (D, D)), "bo": jnp.zeros((1, D), jnp.float32),
        "ln1_g": jnp.ones((1, D), jnp.float32), "ln1_b": jnp.zeros((1, D), jnp.float32),
        "w1": xavier(ks[3], (D, F)), "b1": jnp.zeros((1, F), jnp.float32),
        "w2": xavier(ks[4], (F, D)), "b2": jnp.zeros((1, D), jnp.float32),
        "ln2_g": jnp.ones((1, D), jnp.float32), "ln2_b": jnp.zeros((1, D), jnp.float32),
    }

    q = jax.random.normal(ks[5], (B, S, D), jnp.float32)
    k_in = jax.random.normal(ks[6], (B, S, D), jnp.float32)
    v_in = jax.random.normal(ks[7], (B, S, D), jnp.float32)

    # Case 1: mask=0 -> strictly-past causal mask + zero_pad, distinct q/k/v.
    out0 = jax.block_until_ready(
        transformer_layer(0, q, k_in, v_in, params, n_heads=H, apply_pos=True))
    assert out0.shape == (B, S, D)
    ref0_bf16 = transformer_layer_ref(0, q, k_in, v_in, params, n_heads=H,
                                      matmul_dtype=jnp.bfloat16)
    ref0_f32 = transformer_layer_ref(0, q, k_in, v_in, params, n_heads=H)
    # Tight check against a reference that mirrors the kernel's bf16 matmuls ...
    assert jnp.allclose(out0, ref0_bf16, rtol=2e-2, atol=3e-2), "mismatch vs bf16 reference"
    # ... and a looser check against the exact f32 module semantics.
    assert jnp.allclose(out0, ref0_f32, rtol=1e-1, atol=1e-1), "mismatch vs f32 reference"

    # Case 2: mask=1 (peek current + past, no zero_pad), query is key -> exercises
    # the shared-projection (kq_same + self-attention) fast path.
    out1 = jax.block_until_ready(
        transformer_layer(1, q, q, v_in, params, n_heads=H, apply_pos=True))
    ref1_bf16 = transformer_layer_ref(1, q, q, v_in, params, n_heads=H,
                                      matmul_dtype=jnp.bfloat16)
    assert jnp.allclose(out1, ref1_bf16, rtol=2e-2, atol=3e-2), "mismatch vs bf16 reference (mask=1)"

    print("KERNEL_OK")
</pallas_src>

<mosaic_0001>
module attributes {stable_mosaic.version = 11 : i64} {
  func.func @transformer_layer_kernel(%arg0: i32, %arg1: i32, %arg2: memref<1x8x32xf32, #tpu.memory_space<vmem>>, %arg3: memref<1x8x32xbf16, #tpu.memory_space<vmem>>, %arg4: memref<1x8x32xbf16, #tpu.memory_space<vmem>>, %arg5: memref<32x32xbf16, #tpu.memory_space<vmem>>, %arg6: memref<32x32xbf16, #tpu.memory_space<vmem>>, %arg7: memref<32x32xbf16, #tpu.memory_space<vmem>>, %arg8: memref<32x64xbf16, #tpu.memory_space<vmem>>, %arg9: memref<64x32xbf16, #tpu.memory_space<vmem>>, %arg10: memref<8x32xf32, #tpu.memory_space<vmem>>, %arg11: memref<1x64xf32, #tpu.memory_space<vmem>>, %arg12: memref<1x8x32xf32, #tpu.memory_space<vmem>>, %arg13: memref<32x8xbf16, #tpu.memory_space<vmem>>, %arg14: memref<8x32xbf16, #tpu.memory_space<vmem>>, %arg15: memref<8x32xbf16, #tpu.memory_space<vmem>>, %arg16: memref<8x32xbf16, #tpu.memory_space<vmem>>) attributes {dimension_semantics = [#tpu.dimension_semantics<parallel>, #tpu.dimension_semantics<arbitrary>], iteration_bounds = array<i64: 2, 1>, scalar_prefetch = 0 : i64, scratch_operands = 4 : i64, tpu.core_type = #tpu.core_type<tc>, window_params = [{transform_indices = @transform_0, window_bounds = array<i64: 1, 8, 32>}, {transform_indices = @transform_1, window_bounds = array<i64: 1, 8, 32>}, {transform_indices = @transform_2, window_bounds = array<i64: 1, 8, 32>}, {pipeline_mode = #tpu.pipeline_mode<synchronous>, transform_indices = @transform_3, window_bounds = array<i64: 32, 32>}, {pipeline_mode = #tpu.pipeline_mode<synchronous>, transform_indices = @transform_4, window_bounds = array<i64: 32, 32>}, {pipeline_mode = #tpu.pipeline_mode<synchronous>, transform_indices = @transform_5, window_bounds = array<i64: 32, 32>}, {pipeline_mode = #tpu.pipeline_mode<synchronous>, transform_indices = @transform_6, window_bounds = array<i64: 32, 64>}, {pipeline_mode = #tpu.pipeline_mode<synchronous>, transform_indices = @transform_7, window_bounds = array<i64: 64, 32>}, {pipeline_mode = #tpu.pipeline_mode<synchronous>, transform_indices = @transform_8, window_bounds = array<i64: 8, 32>}, {pipeline_mode = #tpu.pipeline_mode<synchronous>, transform_indices = @transform_9, window_bounds = array<i64: 1, 64>}, {transform_indices = @transform_10, window_bounds = array<i64: 1, 8, 32>}]} {
    %c8_i32 = arith.constant 8 : i32
    %0 = arith.muli %arg1, %c8_i32 : i32
    %c0 = arith.constant 0 : index
    %c0_0 = arith.constant 0 : index
    %1 = vector.load %arg10[%c0, %c0_0] : memref<8x32xf32, #tpu.memory_space<vmem>>, vector<1x32xf32>
    %c1 = arith.constant 1 : index
    %c0_1 = arith.constant 0 : index
    %2 = vector.load %arg10[%c1, %c0_1] : memref<8x32xf32, #tpu.memory_space<vmem>>, vector<1x32xf32>
    %c2 = arith.constant 2 : index
    %c0_2 = arith.constant 0 : index
    %3 = vector.load %arg10[%c2, %c0_2] : memref<8x32xf32, #tpu.memory_space<vmem>>, vector<1x32xf32>
    %c3 = arith.constant 3 : index
    %c0_3 = arith.constant 0 : index
    %4 = vector.load %arg10[%c3, %c0_3] : memref<8x32xf32, #tpu.memory_space<vmem>>, vector<1x32xf32>
    %c4 = arith.constant 4 : index
    %c0_4 = arith.constant 0 : index
    %5 = vector.load %arg10[%c4, %c0_4] : memref<8x32xf32, #tpu.memory_space<vmem>>, vector<1x32xf32>
    %c5 = arith.constant 5 : index
    %c0_5 = arith.constant 0 : index
    %6 = vector.load %arg10[%c5, %c0_5] : memref<8x32xf32, #tpu.memory_space<vmem>>, vector<1x32xf32>
    %c6 = arith.constant 6 : index
    %c0_6 = arith.constant 0 : index
    %7 = vector.load %arg10[%c6, %c0_6] : memref<8x32xf32, #tpu.memory_space<vmem>>, vector<1x32xf32>
    %c7 = arith.constant 7 : index
    %c0_7 = arith.constant 0 : index
    %8 = vector.load %arg10[%c7, %c0_7] : memref<8x32xf32, #tpu.memory_space<vmem>>, vector<1x32xf32>
    %c0_i32 = arith.constant 0 : i32
    %9 = arith.cmpi eq, %arg1, %c0_i32 : i32
    %10 = arith.extui %9 : i1 to i32
    %c0_i32_8 = arith.constant 0 : i32
    %11 = arith.cmpi ne, %10, %c0_i32_8 : i32
    scf.if %11 {
      %c0_99 = arith.constant 0 : index
      %c0_100 = arith.constant 0 : index
      %c0_101 = arith.constant 0 : index
      %196 = vector.load %arg3[%c0_99, %c0_100, %c0_101] : memref<1x8x32xbf16, #tpu.memory_space<vmem>>, vector<1x8x32xbf16>
      %197 = vector.shape_cast %196 : vector<1x8x32xbf16> to vector<8x32xbf16>
      %c0_102 = arith.constant 0 : index
      %c0_103 = arith.constant 0 : index
      %198 = vector.load %arg5[%c0_102, %c0_103] : memref<32x32xbf16, #tpu.memory_space<vmem>>, vector<32x32xbf16>
      %cst_104 = arith.constant dense<0.000000e+00> : vector<8x32xf32>
      %199 = tpu.matmul %197, %198, %cst_104 {dimension_numbers = #tpu.dot_dimension_numbers<[1], [0], [0], [1], [0, 0, 1, 1], [], []>} : vector<8x32xbf16>, vector<32x32xbf16>, vector<8x32xf32> -> vector<8x32xf32>
      %200 = vector.broadcast %1 : vector<1x32xf32> to vector<8x32xf32>
      %201 = arith.addf %199, %200 : vector<8x32xf32>
      %202 = tpu.transpose %201, [1, 0] : vector<8x32xf32> -> vector<32x8xf32>
      %203 = arith.truncf %202 : vector<32x8xf32> to vector<32x8xbf16>
      %c0_105 = arith.constant 0 : index
      %c0_106 = arith.constant 0 : index
      %204 = vector.load %arg13[%c0_105, %c0_106] : memref<32x8xbf16, #tpu.memory_space<vmem>>, vector<32x8xbf16>
      tpu.vector_store %arg13[%c0_105, %c0_106], %203 {strides = array<i32>} : memref<32x8xbf16, #tpu.memory_space<vmem>>, vector<32x8xbf16>,
      %c0_107 = arith.constant 0 : index
      %c0_108 = arith.constant 0 : index
      %c0_109 = arith.constant 0 : index
      %205 = vector.load %arg4[%c0_107, %c0_108, %c0_109] : memref<1x8x32xbf16, #tpu.memory_space<vmem>>, vector<1x8x32xbf16>
      %206 = vector.shape_cast %205 : vector<1x8x32xbf16> to vector<8x32xbf16>
      %c0_110 = arith.constant 0 : index
      %c0_111 = arith.constant 0 : index
      %207 = vector.load %arg6[%c0_110, %c0_111] : memref<32x32xbf16, #tpu.memory_space<vmem>>, vector<32x32xbf16>
      %cst_112 = arith.constant dense<0.000000e+00> : vector<8x32xf32>
      %208 = tpu.matmul %206, %207, %cst_112 {dimension_numbers = #tpu.dot_dimension_numbers<[1], [0], [0], [1], [0, 0, 1, 1], [], []>} : vector<8x32xbf16>, vector<32x32xbf16>, vector<8x32xf32> -> vector<8x32xf32>
      %209 = vector.broadcast %2 : vector<1x32xf32> to vector<8x32xf32>
      %210 = arith.addf %208, %209 : vector<8x32xf32>
      %211 = arith.truncf %210 : vector<8x32xf32> to vector<8x32xbf16>
      %c0_113 = arith.constant 0 : index
      %c0_114 = arith.constant 0 : index
      %212 = vector.load %arg14[%c0_113, %c0_114] : memref<8x32xbf16, #tpu.memory_space<vmem>>, vector<8x32xbf16>
      tpu.vector_store %arg14[%c0_113, %c0_114], %211 {strides = array<i32>} : memref<8x32xbf16, #tpu.memory_space<vmem>>, vector<8x32xbf16>,
    } else {
    }
    %c0_9 = arith.constant 0 : index
    %c0_10 = arith.constant 0 : index
    %c0_11 = arith.constant 0 : index
    %12 = vector.load %arg2[%c0_9, %c0_10, %c0_11] : memref<1x8x32xf32, #tpu.memory_space<vmem>>, vector<1x8x32xf32>
    %13 = vector.shape_cast %12 : vector<1x8x32xf32> to vector<8x32xf32>
    %14 = arith.truncf %13 : vector<8x32xf32> to vector<8x32xbf16>
    %c0_12 = arith.constant 0 : index
    %c0_13 = arith.constant 0 : index
    %15 = vector.load %arg5[%c0_12, %c0_13] : memref<32x32xbf16, #tpu.memory_space<vmem>>, vector<32x32xbf16>
    %cst = arith.constant dense<0.000000e+00> : vector<8x32xf32>
    %16 = tpu.matmul %14, %15, %cst {dimension_numbers = #tpu.dot_dimension_numbers<[1], [0], [0], [1], [0, 0, 1, 1], [], []>} : vector<8x32xbf16>, vector<32x32xbf16>, vector<8x32xf32> -> vector<8x32xf32>
    %17 = vector.broadcast %1 : vector<1x32xf32> to vector<8x32xf32>
    %18 = arith.addf %16, %17 : vector<8x32xf32>
    %cst_14 = arith.constant 0.353553385 : f32
    %19 = vector.broadcast %cst_14 : f32 to vector<8x32xf32>
    %20 = arith.mulf %18, %19 : vector<8x32xf32>
    %21 = arith.truncf %20 : vector<8x32xf32> to vector<8x32xbf16>
    %c0_15 = arith.constant 0 : index
    %c0_16 = arith.constant 0 : index
    %22 = vector.load %arg15[%c0_15, %c0_16] : memref<8x32xbf16, #tpu.memory_space<vmem>>, vector<8x32xbf16>
    tpu.vector_store %arg15[%c0_15, %c0_16], %21 {strides = array<i32>} : memref<8x32xbf16, #tpu.memory_space<vmem>>, vector<8x32xbf16>,
    %23 = tpu.iota {dimensions = array<i32: 0>} : vector<8x8xi32>
    %24 = vector.broadcast %0 : i32 to vector<8x8xi32>
    %25 = arith.addi %24, %23 : vector<8x8xi32>
    %26 = tpu.iota {dimensions = array<i32: 1>} : vector<8x8xi32>
    %c0_i32_17 = arith.constant 0 : i32
    %27 = vector.broadcast %c0_i32_17 : i32 to vector<8x8xi32>
    %28 = arith.addi %25, %27 : vector<8x8xi32>
    %29 = arith.cmpi slt, %26, %28 : vector<8x8xi32>
    %c0_18 = arith.constant 0 : index
    %c0_19 = arith.constant 0 : index
    %30 = vector.load %arg15[%c0_18, %c0_19] : memref<8x32xbf16, #tpu.memory_space<vmem>>, vector<8x8xbf16>
    %c0_20 = arith.constant 0 : index
    %c0_21 = arith.constant 0 : index
    %31 = vector.load %arg13[%c0_20, %c0_21] : memref<32x8xbf16, #tpu.memory_space<vmem>>, vector<8x8xbf16>
    %cst_22 = arith.constant dense<0.000000e+00> : vector<8x8xf32>
    %32 = tpu.matmul %30, %31, %cst_22 {dimension_numbers = #tpu.dot_dimension_numbers<[1], [0], [0], [1], [0, 0, 1, 1], [], []>} : vector<8x8xbf16>, vector<8x8xbf16>, vector<8x8xf32> -> vector<8x8xf32>
    %cst_23 = arith.constant -1.000000e+32 : f32
    %33 = vector.broadcast %cst_23 : f32 to vector<8x8xf32>
    %34 = arith.select %29, %32, %33 : vector<8x8xi1>, vector<8x8xf32>
    %cst_24 = arith.constant dense<0xFF800000> : vector<8xf32>
    %35 = vector.multi_reduction <maximumf>, %34, %cst_24 [1] : vector<8x8xf32> to vector<8xf32>
    %36 = vector.shape_cast %35 : vector<8xf32> to vector<8x1xf32>
    %37 = vector.broadcast %36 : vector<8x1xf32> to vector<8x8xf32>
    %38 = arith.subf %34, %37 : vector<8x8xf32>
    %39 = arith.truncf %38 : vector<8x8xf32> to vector<8x8xbf16>
    %40 = math.exp %39 : vector<8x8xbf16>
    %41 = arith.extf %40 : vector<8x8xbf16> to vector<8x8xf32>
    %cst_25 = arith.constant dense<0.000000e+00> : vector<8xf32>
    %42 = vector.multi_reduction <add>, %41, %cst_25 [1] : vector<8x8xf32> to vector<8xf32>
    %43 = vector.shape_cast %42 : vector<8xf32> to vector<8x1xf32>
    %44 = tpu.reciprocal %43 {approx = true} : vector<8x1xf32> -> vector<8x1xf32>
    %45 = arith.truncf %44 : vector<8x1xf32> to vector<8x1xbf16>
    %46 = vector.broadcast %45 : vector<8x1xbf16> to vector<8x8xbf16>
    %47 = arith.mulf %40, %46 : vector<8x8xbf16>
    %c0_26 = arith.constant 0 : index
    %c0_27 = arith.constant 0 : index
    %48 = vector.load %arg14[%c0_26, %c0_27] : memref<8x32xbf16, #tpu.memory_space<vmem>>, vector<8x8xbf16>
    %cst_28 = arith.constant dense<0.000000e+00> : vector<8x8xf32>
    %49 = tpu.matmul %47, %48, %cst_28 {dimension_numbers = #tpu.dot_dimension_numbers<[1], [0], [0], [1], [0, 0, 1, 1], [], []>} : vector<8x8xbf16>, vector<8x8xbf16>, vector<8x8xf32> -> vector<8x8xf32>
    %50 = arith.truncf %49 : vector<8x8xf32> to vector<8x8xbf16>
    %c0_29 = arith.constant 0 : index
    %c0_30 = arith.constant 0 : index
    %51 = vector.load %arg16[%c0_29, %c0_30] : memref<8x32xbf16, #tpu.memory_space<vmem>>, vector<8x8xbf16>
    tpu.vector_store %arg16[%c0_29, %c0_30], %50 {strides = array<i32>} : memref<8x32xbf16, #tpu.memory_space<vmem>>, vector<8x8xbf16>,
    %c0_31 = arith.constant 0 : index
    %c8 = arith.constant 8 : index
    %52 = vector.load %arg15[%c0_31, %c8] : memref<8x32xbf16, #tpu.memory_space<vmem>>, vector<8x8xbf16>
    %c8_32 = arith.constant 8 : index
    %c0_33 = arith.constant 0 : index
    %53 = vector.load %arg13[%c8_32, %c0_33] : memref<32x8xbf16, #tpu.memory_space<vmem>>, vector<8x8xbf16>
    %cst_34 = arith.constant dense<0.000000e+00> : vector<8x8xf32>
    %54 = tpu.matmul %52, %53, %cst_34 {dimension_numbers = #tpu.dot_dimension_numbers<[1], [0], [0], [1], [0, 0, 1, 1], [], []>} : vector<8x8xbf16>, vector<8x8xbf16>, vector<8x8xf32> -> vector<8x8xf32>
    %cst_35 = arith.constant -1.000000e+32 : f32
    %55 = vector.broadcast %cst_35 : f32 to vector<8x8xf32>
    %56 = arith.select %29, %54, %55 : vector<8x8xi1>, vector<8x8xf32>
    %cst_36 = arith.constant dense<0xFF800000> : vector<8xf32>
    %57 = vector.multi_reduction <maximumf>, %56, %cst_36 [1] : vector<8x8xf32> to vector<8xf32>
    %58 = vector.shape_cast %57 : vector<8xf32> to vector<8x1xf32>
    %59 = vector.broadcast %58 : vector<8x1xf32> to vector<8x8xf32>
    %60 = arith.subf %56, %59 : vector<8x8xf32>
    %61 = arith.truncf %60 : vector<8x8xf32> to vector<8x8xbf16>
    %62 = math.exp %61 : vector<8x8xbf16>
    %63 = arith.extf %62 : vector<8x8xbf16> to vector<8x8xf32>
    %cst_37 = arith.constant dense<0.000000e+00> : vector<8xf32>
    %64 = vector.multi_reduction <add>, %63, %cst_37 [1] : vector<8x8xf32> to vector<8xf32>
    %65 = vector.shape_cast %64 : vector<8xf32> to vector<8x1xf32>
    %66 = tpu.reciprocal %65 {approx = true} : vector<8x1xf32> -> vector<8x1xf32>
    %67 = arith.truncf %66 : vector<8x1xf32> to vector<8x1xbf16>
    %68 = vector.broadcast %67 : vector<8x1xbf16> to vector<8x8xbf16>
    %69 = arith.mulf %62, %68 : vector<8x8xbf16>
    %c0_38 = arith.constant 0 : index
    %c8_39 = arith.constant 8 : index
    %70 = vector.load %arg14[%c0_38, %c8_39] : memref<8x32xbf16, #tpu.memory_space<vmem>>, vector<8x8xbf16>
    %cst_40 = arith.constant dense<0.000000e+00> : vector<8x8xf32>
    %71 = tpu.matmul %69, %70, %cst_40 {dimension_numbers = #tpu.dot_dimension_numbers<[1], [0], [0], [1], [0, 0, 1, 1], [], []>} : vector<8x8xbf16>, vector<8x8xbf16>, vector<8x8xf32> -> vector<8x8xf32>
    %72 = arith.truncf %71 : vector<8x8xf32> to vector<8x8xbf16>
    %c0_41 = arith.constant 0 : index
    %c8_42 = arith.constant 8 : index
    %73 = vector.load %arg16[%c0_41, %c8_42] : memref<8x32xbf16, #tpu.memory_space<vmem>>, vector<8x8xbf16>
    tpu.vector_store %arg16[%c0_41, %c8_42], %72 {strides = array<i32>} : memref<8x32xbf16, #tpu.memory_space<vmem>>, vector<8x8xbf16>,
    %c0_43 = arith.constant 0 : index
    %c16 = arith.constant 16 : index
    %74 = vector.load %arg15[%c0_43, %c16] : memref<8x32xbf16, #tpu.memory_space<vmem>>, vector<8x8xbf16>
    %c16_44 = arith.constant 16 : index
    %c0_45 = arith.constant 0 : index
    %75 = vector.load %arg13[%c16_44, %c0_45] : memref<32x8xbf16, #tpu.memory_space<vmem>>, vector<8x8xbf16>
    %cst_46 = arith.constant dense<0.000000e+00> : vector<8x8xf32>
    %76 = tpu.matmul %74, %75, %cst_46 {dimension_numbers = #tpu.dot_dimension_numbers<[1], [0], [0], [1], [0, 0, 1, 1], [], []>} : vector<8x8xbf16>, vector<8x8xbf16>, vector<8x8xf32> -> vector<8x8xf32>
    %cst_47 = arith.constant -1.000000e+32 : f32
    %77 = vector.broadcast %cst_47 : f32 to vector<8x8xf32>
    %78 = arith.select %29, %76, %77 : vector<8x8xi1>, vector<8x8xf32>
    %cst_48 = arith.constant dense<0xFF800000> : vector<8xf32>
    %79 = vector.multi_reduction <maximumf>, %78, %cst_48 [1] : vector<8x8xf32> to vector<8xf32>
    %80 = vector.shape_cast %79 : vector<8xf32> to vector<8x1xf32>
    %81 = vector.broadcast %80 : vector<8x1xf32> to vector<8x8xf32>
    %82 = arith.subf %78, %81 : vector<8x8xf32>
    %83 = arith.truncf %82 : vector<8x8xf32> to vector<8x8xbf16>
    %84 = math.exp %83 : vector<8x8xbf16>
    %85 = arith.extf %84 : vector<8x8xbf16> to vector<8x8xf32>
    %cst_49 = arith.constant dense<0.000000e+00> : vector<8xf32>
    %86 = vector.multi_reduction <add>, %85, %cst_49 [1] : vector<8x8xf32> to vector<8xf32>
    %87 = vector.shape_cast %86 : vector<8xf32> to vector<8x1xf32>
    %88 = tpu.reciprocal %87 {approx = true} : vector<8x1xf32> -> vector<8x1xf32>
    %89 = arith.truncf %88 : vector<8x1xf32> to vector<8x1xbf16>
    %90 = vector.broadcast %89 : vector<8x1xbf16> to vector<8x8xbf16>
    %91 = arith.mulf %84, %90 : vector<8x8xbf16>
    %c0_50 = arith.constant 0 : index
    %c16_51 = arith.constant 16 : index
    %92 = vector.load %arg14[%c0_50, %c16_51] : memref<8x32xbf16, #tpu.memory_space<vmem>>, vector<8x8xbf16>
    %cst_52 = arith.constant dense<0.000000e+00> : vector<8x8xf32>
    %93 = tpu.matmul %91, %92, %cst_52 {dimension_numbers = #tpu.dot_dimension_numbers<[1], [0], [0], [1], [0, 0, 1, 1], [], []>} : vector<8x8xbf16>, vector<8x8xbf16>, vector<8x8xf32> -> vector<8x8xf32>
    %94 = arith.truncf %93 : vector<8x8xf32> to vector<8x8xbf16>
    %c0_53 = arith.constant 0 : index
    %c16_54 = arith.constant 16 : index
    %95 = vector.load %arg16[%c0_53, %c16_54] : memref<8x32xbf16, #tpu.memory_space<vmem>>, vector<8x8xbf16>
    tpu.vector_store %arg16[%c0_53, %c16_54], %94 {strides = array<i32>} : memref<8x32xbf16, #tpu.memory_space<vmem>>, vector<8x8xbf16>,
    %c0_55 = arith.constant 0 : index
    %c24 = arith.constant 24 : index
    %96 = vector.load %arg15[%c0_55, %c24] : memref<8x32xbf16, #tpu.memory_space<vmem>>, vector<8x8xbf16>
    %c24_56 = arith.constant 24 : index
    %c0_57 = arith.constant 0 : index
    %97 = vector.load %arg13[%c24_56, %c0_57] : memref<32x8xbf16, #tpu.memory_space<vmem>>, vector<8x8xbf16>
    %cst_58 = arith.constant dense<0.000000e+00> : vector<8x8xf32>
    %98 = tpu.matmul %96, %97, %cst_58 {dimension_numbers = #tpu.dot_dimension_numbers<[1], [0], [0], [1], [0, 0, 1, 1], [], []>} : vector<8x8xbf16>, vector<8x8xbf16>, vector<8x8xf32> -> vector<8x8xf32>
    %cst_59 = arith.constant -1.000000e+32 : f32
    %99 = vector.broadcast %cst_59 : f32 to vector<8x8xf32>
    %100 = arith.select %29, %98, %99 : vector<8x8xi1>, vector<8x8xf32>
    %cst_60 = arith.constant dense<0xFF800000> : vector<8xf32>
    %101 = vector.multi_reduction <maximumf>, %100, %cst_60 [1] : vector<8x8xf32> to vector<8xf32>
    %102 = vector.shape_cast %101 : vector<8xf32> to vector<8x1xf32>
    %103 = vector.broadcast %102 : vector<8x1xf32> to vector<8x8xf32>
    %104 = arith.subf %100, %103 : vector<8x8xf32>
    %105 = arith.truncf %104 : vector<8x8xf32> to vector<8x8xbf16>
    %106 = math.exp %105 : vector<8x8xbf16>
    %107 = arith.extf %106 : vector<8x8xbf16> to vector<8x8xf32>
    %cst_61 = arith.constant dense<0.000000e+00> : vector<8xf32>
    %108 = vector.multi_reduction <add>, %107, %cst_61 [1] : vector<8x8xf32> to vector<8xf32>
    %109 = vector.shape_cast %108 : vector<8xf32> to vector<8x1xf32>
    %110 = tpu.reciprocal %109 {approx = true} : vector<8x1xf32> -> vector<8x1xf32>
    %111 = arith.truncf %110 : vector<8x1xf32> to vector<8x1xbf16>
    %112 = vector.broadcast %111 : vector<8x1xbf16> to vector<8x8xbf16>
    %113 = arith.mulf %106, %112 : vector<8x8xbf16>
    %c0_62 = arith.constant 0 : index
    %c24_63 = arith.constant 24 : index
    %114 = vector.load %arg14[%c0_62, %c24_63] : memref<8x32xbf16, #tpu.memory_space<vmem>>, vector<8x8xbf16>
    %cst_64 = arith.constant dense<0.000000e+00> : vector<8x8xf32>
    %115 = tpu.matmul %113, %114, %cst_64 {dimension_numbers = #tpu.dot_dimension_numbers<[1], [0], [0], [1], [0, 0, 1, 1], [], []>} : vector<8x8xbf16>, vector<8x8xbf16>, vector<8x8xf32> -> vector<8x8xf32>
    %116 = arith.truncf %115 : vector<8x8xf32> to vector<8x8xbf16>
    %c0_65 = arith.constant 0 : index
    %c24_66 = arith.constant 24 : index
    %117 = vector.load %arg16[%c0_65, %c24_66] : memref<8x32xbf16, #tpu.memory_space<vmem>>, vector<8x8xbf16>
    tpu.vector_store %arg16[%c0_65, %c24_66], %116 {strides = array<i32>} : memref<8x32xbf16, #tpu.memory_space<vmem>>, vector<8x8xbf16>,
    %c0_67 = arith.constant 0 : index
    %c0_68 = arith.constant 0 : index
    %118 = vector.load %arg16[%c0_67, %c0_68] : memref<8x32xbf16, #tpu.memory_space<vmem>>, vector<8x32xbf16>
    %c0_69 = arith.constant 0 : index
    %c0_70 = arith.constant 0 : index
    %119 = vector.load %arg7[%c0_69, %c0_70] : memref<32x32xbf16, #tpu.memory_space<vmem>>, vector<32x32xbf16>
    %cst_71 = arith.constant dense<0.000000e+00> : vector<8x32xf32>
    %120 = tpu.matmul %118, %119, %cst_71 {dimension_numbers = #tpu.dot_dimension_numbers<[1], [0], [0], [1], [0, 0, 1, 1], [], []>} : vector<8x32xbf16>, vector<32x32xbf16>, vector<8x32xf32> -> vector<8x32xf32>
    %121 = tpu.iota {dimensions = array<i32: 0>} : vector<8x1xi32>
    %122 = vector.broadcast %0 : i32 to vector<8x1xi32>
    %123 = arith.addi %122, %121 : vector<8x1xi32>
    %c0_i32_72 = arith.constant 0 : i32
    %124 = vector.broadcast %c0_i32_72 : i32 to vector<8x1xi32>
    %125 = arith.cmpi sgt, %123, %124 : vector<8x1xi32>
    %cst_73 = arith.constant 0.000000e+00 : f32
    %126 = vector.shape_cast %125 : vector<8x1xi1> to vector<8x1xi1>
    %127 = vector.broadcast %126 : vector<8x1xi1> to vector<8x32xi1>
    %128 = vector.broadcast %cst_73 : f32 to vector<8x32xf32>
    %129 = arith.select %127, %120, %128 : vector<8x32xi1>, vector<8x32xf32>
    %130 = vector.broadcast %3 : vector<1x32xf32> to vector<8x32xf32>
    %131 = arith.addf %129, %130 : vector<8x32xf32>
    %c0_74 = arith.constant 0 : index
    %c0_75 = arith.constant 0 : index
    %c0_76 = arith.constant 0 : index
    %132 = vector.load %arg2[%c0_74, %c0_75, %c0_76] : memref<1x8x32xf32, #tpu.memory_space<vmem>>, vector<1x8x32xf32>
    %133 = vector.shape_cast %132 : vector<1x8x32xf32> to vector<8x32xf32>
    %134 = arith.addf %133, %131 : vector<8x32xf32>
    %cst_77 = arith.constant dense<0.000000e+00> : vector<8xf32>
    %135 = vector.multi_reduction <add>, %134, %cst_77 [1] : vector<8x32xf32> to vector<8xf32>
    %136 = vector.shape_cast %135 : vector<8xf32> to vector<8x1xf32>
    %cst_78 = arith.constant 3.200000e+01 : f32
    %137 = vector.broadcast %cst_78 : f32 to vector<8x1xf32>
    %138 = arith.divf %136, %137 : vector<8x1xf32>
    %139 = vector.broadcast %138 : vector<8x1xf32> to vector<8x32xf32>
    %140 = arith.subf %134, %139 : vector<8x32xf32>
    %141 = arith.mulf %140, %140 : vector<8x32xf32>
    %cst_79 = arith.constant dense<0.000000e+00> : vector<8xf32>
    %142 = vector.multi_reduction <add>, %141, %cst_79 [1] : vector<8x32xf32> to vector<8xf32>
    %143 = vector.shape_cast %142 : vector<8xf32> to vector<8x1xf32>
    %cst_80 = arith.constant 3.200000e+01 : f32
    %144 = vector.broadcast %cst_80 : f32 to vector<8x1xf32>
    %145 = arith.divf %143, %144 : vector<8x1xf32>
    %146 = vector.broadcast %138 : vector<8x1xf32> to vector<8x32xf32>
    %147 = arith.subf %134, %146 : vector<8x32xf32>
    %cst_81 = arith.constant 9.99999974E-6 : f32
    %148 = vector.broadcast %cst_81 : f32 to vector<8x1xf32>
    %149 = arith.addf %145, %148 : vector<8x1xf32>
    %150 = math.rsqrt %149 : vector<8x1xf32>
    %151 = vector.broadcast %150 : vector<8x1xf32> to vector<8x32xf32>
    %152 = arith.mulf %147, %151 : vector<8x32xf32>
    %153 = vector.broadcast %4 : vector<1x32xf32> to vector<8x32xf32>
    %154 = arith.mulf %152, %153 : vector<8x32xf32>
    %155 = vector.broadcast %5 : vector<1x32xf32> to vector<8x32xf32>
    %156 = arith.addf %154, %155 : vector<8x32xf32>
    %157 = arith.truncf %156 : vector<8x32xf32> to vector<8x32xbf16>
    %c0_82 = arith.constant 0 : index
    %c0_83 = arith.constant 0 : index
    %158 = vector.load %arg8[%c0_82, %c0_83] : memref<32x64xbf16, #tpu.memory_space<vmem>>, vector<32x64xbf16>
    %cst_84 = arith.constant dense<0.000000e+00> : vector<8x64xf32>
    %159 = tpu.matmul %157, %158, %cst_84 {dimension_numbers = #tpu.dot_dimension_numbers<[1], [0], [0], [1], [0, 0, 1, 1], [], []>} : vector<8x32xbf16>, vector<32x64xbf16>, vector<8x64xf32> -> vector<8x64xf32>
    %c0_85 = arith.constant 0 : index
    %c0_86 = arith.constant 0 : index
    %160 = vector.load %arg11[%c0_85, %c0_86] : memref<1x64xf32, #tpu.memory_space<vmem>>, vector<1x64xf32>
    %161 = vector.broadcast %160 : vector<1x64xf32> to vector<8x64xf32>
    %162 = arith.addf %159, %161 : vector<8x64xf32>
    %cst_87 = arith.constant 0.000000e+00 : f32
    %163 = vector.broadcast %cst_87 : f32 to vector<8x64xf32>
    %164 = arith.maximumf %162, %163 : vector<8x64xf32>
    %165 = arith.truncf %164 : vector<8x64xf32> to vector<8x64xbf16>
    %c0_88 = arith.constant 0 : index
    %c0_89 = arith.constant 0 : index
    %166 = vector.load %arg9[%c0_88, %c0_89] : memref<64x32xbf16, #tpu.memory_space<vmem>>, vector<64x32xbf16>
    %cst_90 = arith.constant dense<0.000000e+00> : vector<8x32xf32>
    %167 = tpu.matmul %165, %166, %cst_90 {dimension_numbers = #tpu.dot_dimension_numbers<[1], [0], [0], [1], [0, 0, 1, 1], [], []>} : vector<8x64xbf16>, vector<64x32xbf16>, vector<8x32xf32> -> vector<8x32xf32>
    %168 = vector.broadcast %6 : vector<1x32xf32> to vector<8x32xf32>
    %169 = arith.addf %167, %168 : vector<8x32xf32>
    %170 = arith.addf %156, %169 : vector<8x32xf32>
    %cst_91 = arith.constant dense<0.000000e+00> : vector<8xf32>
    %171 = vector.multi_reduction <add>, %170, %cst_91 [1] : vector<8x32xf32> to vector<8xf32>
    %172 = vector.shape_cast %171 : vector<8xf32> to vector<8x1xf32>
    %cst_92 = arith.constant 3.200000e+01 : f32
    %173 = vector.broadcast %cst_92 : f32 to vector<8x1xf32>
    %174 = arith.divf %172, %173 : vector<8x1xf32>
    %175 = vector.broadcast %174 : vector<8x1xf32> to vector<8x32xf32>
    %176 = arith.subf %170, %175 : vector<8x32xf32>
    %177 = arith.mulf %176, %176 : vector<8x32xf32>
    %cst_93 = arith.constant dense<0.000000e+00> : vector<8xf32>
    %178 = vector.multi_reduction <add>, %177, %cst_93 [1] : vector<8x32xf32> to vector<8xf32>
    %179 = vector.shape_cast %178 : vector<8xf32> to vector<8x1xf32>
    %cst_94 = arith.constant 3.200000e+01 : f32
    %180 = vector.broadcast %cst_94 : f32 to vector<8x1xf32>
    %181 = arith.divf %179, %180 : vector<8x1xf32>
    %182 = vector.broadcast %174 : vector<8x1xf32> to vector<8x32xf32>
    %183 = arith.subf %170, %182 : vector<8x32xf32>
    %cst_95 = arith.constant 9.99999974E-6 : f32
    %184 = vector.broadcast %cst_95 : f32 to vector<8x1xf32>
    %185 = arith.addf %181, %184 : vector<8x1xf32>
    %186 = math.rsqrt %185 : vector<8x1xf32>
    %187 = vector.broadcast %186 : vector<8x1xf32> to vector<8x32xf32>
    %188 = arith.mulf %183, %187 : vector<8x32xf32>
    %189 = vector.broadcast %7 : vector<1x32xf32> to vector<8x32xf32>
    %190 = arith.mulf %188, %189 : vector<8x32xf32>
    %191 = vector.broadcast %8 : vector<1x32xf32> to vector<8x32xf32>
    %192 = arith.addf %190, %191 : vector<8x32xf32>
    %c0_96 = arith.constant 0 : index
    %c0_97 = arith.constant 0 : index
    %c0_98 = arith.constant 0 : index
    %193 = vector.load %arg12[%c0_96, %c0_97, %c0_98] : memref<1x8x32xf32, #tpu.memory_space<vmem>>, vector<1x8x32xf32>
    %194 = vector.shape_cast %193 : vector<1x8x32xf32> to vector<8x32xf32>
    %195 = vector.shape_cast %192 : vector<8x32xf32> to vector<1x8x32xf32>
    tpu.vector_store %arg12[%c0_96, %c0_97, %c0_98], %195 {strides = array<i32>} : memref<1x8x32xf32, #tpu.memory_space<vmem>>, vector<1x8x32xf32>,
    return
  }
  func.func @transform_0(%arg0: i32, %arg1: i32) -> (i32, i32, i32) {
    %c0_i32 = arith.constant 0 : i32
    %c0_i32_0 = arith.constant 0 : i32
    return %arg0, %arg1, %c0_i32 : i32, i32, i32
  }
  func.func @transform_1(%arg0: i32, %arg1: i32) -> (i32, i32, i32) {
    %c0_i32 = arith.constant 0 : i32
    %c0_i32_0 = arith.constant 0 : i32
    %c0_i32_1 = arith.constant 0 : i32
    return %arg0, %c0_i32, %c0_i32_0 : i32, i32, i32
  }
  func.func @transform_2(%arg0: i32, %arg1: i32) -> (i32, i32, i32) {
    %c0_i32 = arith.constant 0 : i32
    %c0_i32_0 = arith.constant 0 : i32
    %c0_i32_1 = arith.constant 0 : i32
    return %arg0, %c0_i32, %c0_i32_0 : i32, i32, i32
  }
  func.func @transform_3(%arg0: i32, %arg1: i32) -> (i32, i32) {
    %c0_i32 = arith.constant 0 : i32
    %c0_i32_0 = arith.constant 0 : i32
    %c0_i32_1 = arith.constant 0 : i32
    return %c0_i32, %c0_i32_0 : i32, i32
  }
  func.func @transform_4(%arg0: i32, %arg1: i32) -> (i32, i32) {
    %c0_i32 = arith.constant 0 : i32
    %c0_i32_0 = arith.constant 0 : i32
    %c0_i32_1 = arith.constant 0 : i32
    return %c0_i32, %c0_i32_0 : i32, i32
  }
  func.func @transform_5(%arg0: i32, %arg1: i32) -> (i32, i32) {
    %c0_i32 = arith.constant 0 : i32
    %c0_i32_0 = arith.constant 0 : i32
    %c0_i32_1 = arith.constant 0 : i32
    return %c0_i32, %c0_i32_0 : i32, i32
  }
  func.func @transform_6(%arg0: i32, %arg1: i32) -> (i32, i32) {
    %c0_i32 = arith.constant 0 : i32
    %c0_i32_0 = arith.constant 0 : i32
    %c0_i32_1 = arith.constant 0 : i32
    return %c0_i32, %c0_i32_0 : i32, i32
  }
  func.func @transform_7(%arg0: i32, %arg1: i32) -> (i32, i32) {
    %c0_i32 = arith.constant 0 : i32
    %c0_i32_0 = arith.constant 0 : i32
    %c0_i32_1 = arith.constant 0 : i32
    return %c0_i32, %c0_i32_0 : i32, i32
  }
  func.func @transform_8(%arg0: i32, %arg1: i32) -> (i32, i32) {
    %c0_i32 = arith.constant 0 : i32
    %c0_i32_0 = arith.constant 0 : i32
    %c0_i32_1 = arith.constant 0 : i32
    return %c0_i32, %c0_i32_0 : i32, i32
  }
  func.func @transform_9(%arg0: i32, %arg1: i32) -> (i32, i32) {
    %c0_i32 = arith.constant 0 : i32
    %c0_i32_0 = arith.constant 0 : i32
    %c0_i32_1 = arith.constant 0 : i32
    return %c0_i32, %c0_i32_0 : i32, i32
  }
  func.func @transform_10(%arg0: i32, %arg1: i32) -> (i32, i32, i32) {
    %c0_i32 = arith.constant 0 : i32
    %c0_i32_0 = arith.constant 0 : i32
    return %arg0, %arg1, %c0_i32 : i32, i32, i32
  }
}

</mosaic_0001>

<bundles_post_ra>
// kernel: tpu_custom_call.1
= control target key start
LH: loop header
LB: loop body
LE: loop exit
PB: predicated region body
PF: predicated region fallthrough
CT: control target
= control target key end

     0   :  { %s2760_s0 = inlined_call_operand.vmem [shape: f32[2,8,32], index: 0, kind: input, shape index: {}]   ;;  %s2761_s1 = inlined_call_operand.hbm [shape: bf16[2,8,32], index: 1, kind: input, shape index: {}]   ;;  %s2762_s2 = inlined_call_operand.hbm [shape: bf16[2,8,32], index: 2, kind: input, shape index: {}]   ;;  %s2763_s3 = inlined_call_operand.vmem [shape: bf16[32,32], index: 3, kind: input, shape index: {}]   ;;  %s2764_s4 = inlined_call_operand.vmem [shape: bf16[32,32], index: 4, kind: input, shape index: {}]   ;;  %s2765_s5 = inlined_call_operand.hbm [shape: bf16[32,32], index: 5, kind: input, shape index: {}]   ;;  %s2766_s6 = inlined_call_operand.hbm [shape: bf16[32,64], index: 6, kind: input, shape index: {}]   ;;  %s2767_s7 = inlined_call_operand.vmem [shape: bf16[64,32], index: 7, kind: input, shape index: {}]   ;;  %s2768_s8 = inlined_call_operand.vmem [shape: f32[8,32], index: 8, kind: input, shape index: {}]   ;;  %s2769_s9 = inlined_call_operand.vmem [shape: f32[1,64], index: 9, kind: input, shape index: {}]   ;;  %s2770_s10 = inlined_call_operand.hbm [shape: f32[2,8,32], index: 10, kind: output, shape index: {}]  }
   0x1   :  { %2780 = sst [smem:[#allocation25_spill]] %s2765_s5 }
   0x2   :  { %2781 = sst [smem:[#allocation26_spill]] %s2766_s6 }
   0x3   :  { %2782 = sst [smem:[#allocation27_spill]] %s2769_s9 }
   0x4   :  { %2783 = sst [smem:[#allocation28_spill]] %s2770_s10 }
   0x5   :  { %15 = vsyncpa [#allocation7], 0 }
   0x6   :  { %17 = vsyncpa [#allocation7 + $0x1], 0 }
   0x7   :  { %18 = vsyncpa [#allocation10], 0 }
   0x8   :  { %20 = vsyncpa [#allocation10 + $0x1], 0 }
   0x9   :  { %21 = vsyncpa [#allocation13], 0 }
   0xa   :  { %22 = vsyncpa [#allocation8], 0 }
   0xb   :  { %24 = vsyncpa [#allocation8 + $0x1], 0  ;;  %s2299_s13 = smov 0   ;;  %s2301_s14 = smov 0  }
   0xc   :  { %s2303_s15 = smov 0   ;;  %s2305_s16 = smov 0  }
   0xd   :  { %s2307_s17 = smov 0   ;;  %s2309_s18 = smov 0  }
   0xe LB: > { %2784 = sst [smem:[#allocation20_spill]] %s2207_s13  ;;  %s2330_s19 = sadd.s32 4294967295, %s2227_s18   ;;  %s2227_s18 = sphi %s2309_s18, %s30_s18   ;;  %s2223_s17 = sphi %s2307_s17, %s2813_s17   ;;  %s2219_s16 = sphi %s2305_s16, %s2812_s16   ;;  %s2215_s15 = sphi %s2303_s15, %s2816_s15   ;;  %s2211_s14 = sphi %s2301_s14, %s2815_s14   ;;  %s2207_s13 = sphi %s2299_s13, %s2814_s13  }
   0xf   : > { %2785 = sst [smem:[#allocation21_spill]] %s2223_s17  ;;  %s1674_s20 = sadd.s32 4294967294, %s2227_s18  }
  0x10   : > { %p90_p0 = scmp.ne.s32.totalorder %s2211_s14, %s2207_s13  ;;  %p2772_p1 = scmp.eq.s32.totalorder %s2330_s19, 0 }
  0x11   : > { %p295_p3 = scmp.eq.s32.totalorder %s1674_s20, 1  ;;  %p1675_p5 = scmp.ge.s32.totalorder %s2227_s18, 1 }
  0x12   : > { %p2339_p4 = por %p2772_p1, %p90_p0  ;;  %p302_p7 = scmp.lt.s32.totalorder %s2227_s18, 3 }
  0x13   : > { %p2344_p6 = por %p295_p3, %p90_p0  ;;  %s2229_s24 = smov [#allocation11]  }
  0x14   : > { %s2786_s21 = scalar_select %p2339_p4, 1, 0 }
  0x15   : > { %s2787_s22 = scalar_select %p2344_p6, 1, 0 }
  0x16   : > { %p2349_p8 = pnand %p1675_p5, %p302_p7  ;;  %s320_s25 = sshll.u32 %s2229_s24, 4  ;;  %s2353_s25 = int_to_ptr.vmem [resolvable:$true] %s320_s25 }
  0x17   : > { %2788 = sst [smem:[#allocation22_spill]] %s2787_s22  ;;  %s2230_s27 = smov [#allocation12]  }
  0x18   : > { %s2789_s23 = scalar_select %p2349_p8, 1, 0 }
  0x19   : > { %p1893_p9 = pneg %p2349_p8  ;;  %s333_s28 = sshll.u32 %s2230_s27, 4  ;;  %s2364_s28 = int_to_ptr.vmem [resolvable:$true] %s333_s28 }
  0x1a   : > { %s2791_s5 = sld [smem:[#allocation25_spill]] }
  0x1b   : > { %p2360_p11 = pnand %p1893_p9, %p2772_p1 }
  0x1d   : > { %p2019_p13 = pneg %p2360_p11 }
  0x20   : > { %s2017_s11 = scalar_lea.hbm %s2791_s5, 256 }
  0x21   : > { %p2018_p12 = scmp.ne.s32.totalorder %s2791_s5, %s2017_s11  ;;  %p2024_p5 = scmp.lt.u32.totalorder %s2017_s11, %s2791_s5 }
  0x23   : > { %p2020_p0 = pnand %p2019_p13, %p2018_p12 }
  0x25   : > { %p2021_p3 = pneg %p2020_p0 }
  0x27   : > { %p2026_p7 = pnand %p2024_p5, %p2021_p3 }
  0x29   : > { %2029 = shalt.err (!%p2026_p7)
}
  0x2a   : > { %s2030_s27 = scalar_lea.vmem %s2353_s25, 256  ;;  %p2038_p2 = scmp.lt.s32.totalorder %s2353_s25, %s2353_s25 }
  0x2b   : > { %p2031_p9 = scmp.ne.s32.totalorder %s2353_s25, %s2030_s27  ;;  %p2039_p12 = scmp.lt.s32.totalorder %s2030_s27, %s2030_s27 }
  0x2d   : > { %p2033_p10 = pnand %p2031_p9, %p2019_p13  ;;  %p2040_p0 = por %p2039_p12, %p2038_p2 }
  0x2f   : > { %p2034_p1 = pneg %p2033_p10 }
  0x31   : > { %p2041_p6 = pnand %p2040_p0, %p2034_p1 }
  0x33   : > { %2044 = shalt.err (!%p2041_p6)
}
  0x34   : > { %s2231_s22 = smov 64   ;;  %s2232_s29 = smov 4  }
  0x35   : > { %1896 = dma.hbm_to_vmem [thread:$0]  (!%p2360_p11), %s2791_s5, 256, %s2353_s25, [#allocation10], %s2231_s22, %s2231_s22, %s2232_s29  }
  0x36   : > { %s2792_s6 = sld [smem:[#allocation26_spill]] }
  0x3c   : > { %s2045_s24 = scalar_lea.hbm %s2792_s6, 256 }
  0x3d   : > { %p2046_p2 = scmp.ne.s32.totalorder %s2792_s6, %s2045_s24  ;;  %p2052_p10 = scmp.lt.u32.totalorder %s2045_s24, %s2792_s6 }
  0x3f   : > { %p2048_p1 = pnand %p2046_p2, %p2019_p13 }
  0x41   : > { %p2049_p6 = pneg %p2048_p1 }
  0x43   : > { %p2054_p3 = pnand %p2052_p10, %p2049_p6 }
  0x45   : > { %2057 = shalt.err (!%p2054_p3)
}
  0x46   : > { %s2058_s25 = scalar_lea.vmem %s2364_s28, 256  ;;  %p2066_p12 = scmp.lt.s32.totalorder %s2364_s28, %s2364_s28 }
  0x47   : > { %p2059_p5 = scmp.ne.s32.totalorder %s2364_s28, %s2058_s25  ;;  %p2067_p0 = scmp.lt.s32.totalorder %s2058_s25, %s2058_s25 }
  0x49   : > { %p2061_p7 = pnand %p2059_p5, %p2019_p13  ;;  %p2068_p2 = por %p2067_p0, %p2066_p12 }
  0x4b   : > { %p2062_p9 = pneg %p2061_p7 }
  0x4d   : > { %p2069_p1 = pnand %p2068_p2, %p2062_p9 }
  0x4f   : > { %2072 = shalt.err (!%p2069_p1)
}
  0x50   : > { %1899 = dma.hbm_to_vmem [thread:$0]  (!%p2360_p11), %s2792_s6, 256, %s2364_s28, [#allocation13], %s2231_s22, %s2231_s22, %s2232_s29  }
  0x51   : > { %s42_s13 = sadd.s32 1, %s2223_s17  ;;  %s77_s30 = sadd.s32 1, %s2215_s15 }
  0x52   : > { %p44_p13 = scmp.ge.s32.totalorder %s42_s13, 2  ;;  %p84_p6 = scmp.ne.s32.totalorder %s2215_s15, %s2211_s14 }
  0x53   : > { %p85_p10 = scmp.eq.s32.totalorder %s2227_s18, 0  ;;  %p1913_p3 = scmp.lt.s32.totalorder %s2227_s18, 2 }
  0x54   : > { %s2818_s13 = smov (%p44_p13, %s42_s13), 0  ;;  %p2794_p7 = scmp.eq.s32.totalorder %s2330_s19, 1 }
  0x55   : > { %2793 = sst [smem:[#allocation23_spill]] %s2818_s13  ;;  %p86_p5 = por %p85_p10, %p84_p6 }
  0x56   : > { %p2428_p9 = por %p2794_p7, %p84_p6  ;;  %s74_s11 = ssub.s32 %s2223_s17, %s2818_s13 }
  0x57   : > { %s366_s12 = sand.u32 1, %s2215_s15   ;;  %p75_p12 = scmp.eq.s32.totalorder %s74_s11, 0 }
  0x58   : > { %s2795_s26 = scalar_select %p2428_p9, 1, 0 }
  0x59   : > { %s2435_s28 = sshll.u32 %s366_s12, 2  ;;  %s1680_s22 = sshll.u32 %s2223_s17, 6 }
  0x5a   : > { %s2439_s29 = scalar_select %p75_p12, %s2215_s15, %s77_s30  }
  0x5b   : > { %s2444_s27 = scalar_lea.hbm %s2761_s1, %s1680_s22  ;;  %s370_s25 = scalar_lea.vmem [#allocation6], %s2435_s28 }
  0x5c   : > { %2796 = sst [smem:[#allocation24_spill]] %s2439_s29  ;;  %s377_s9 = sshll.u32 %s370_s25, 4  ;;  %s2453_s9 = int_to_ptr.vmem [resolvable:$true] %s377_s9 }
  0x5d   : > { %p2449_p11 = pnand %p1913_p3, %p86_p5  ;;  %s2458_s20 = scalar_lea.hbm %s2762_s2, %s1680_s22 }
  0x5e   : > { %s367_s24 = scalar_lea.sflag [#allocation7], %s366_s12  ;;  %s2073_s5 = scalar_lea.hbm %s2444_s27, 64 }
  0x5f   : > { %p2074_p0 = scmp.ne.s32.totalorder %s2444_s27, %s2073_s5  ;;  %p2075_p2 = pneg %p2449_p11 }
  0x60   : > { %s2078_s13 = scalar_lea.hbm %s2761_s1, 128  ;;  %p2079_p6 = scmp.lt.u32.totalorder %s2444_s27, %s2761_s1 }
  0x61   : > { %p2076_p1 = pnand %p2075_p2, %p2074_p0  ;;  %p2080_p10 = scmp.lt.u32.totalorder %s2078_s13, %s2073_s5 }
  0x62   : > { %p2082_p5 = scmp.lt.u32.totalorder %s2073_s5, %s2444_s27 }
  0x63   : > { %p2077_p13 = pneg %p2076_p1  ;;  %p2081_p3 = por %p2080_p10, %p2079_p6 }
  0x65   : > { %p2083_p7 = por %p2082_p5, %p2081_p3 }
  0x67   : > { %p2084_p12 = pnand %p2083_p7, %p2077_p13 }
  0x69   : > { %2087 = shalt.err (!%p2084_p12)
}
  0x6a   : > { %s2088_s12 = scalar_lea.vmem %s2453_s9, 64  ;;  %s2233_s6 = smov [#allocation6]  }
  0x6b   : > { %p2089_p0 = scmp.ne.s32.totalorder %s2453_s9, %s2088_s12  ;;  %s2093_s22 = sshll.u32 %s2233_s6, 4  ;;  %s2094_s22 = int_to_ptr.vmem [resolvable:$false] %s2093_s22 }
  0x6c   : > { %s2095_s17 = scalar_lea.vmem %s2094_s22, 128  ;;  %p2096_p4 = scmp.lt.s32.totalorder %s2453_s9, %s2094_s22 }
  0x6d   : > { %p2091_p1 = pnand %p2089_p0, %p2075_p2  ;;  %p2097_p6 = scmp.lt.s32.totalorder %s2095_s17, %s2088_s12 }
  0x6f   : > { %p2092_p9 = pneg %p2091_p1  ;;  %p2098_p10 = por %p2097_p6, %p2096_p4 }
  0x71   : > { %p2099_p3 = pnand %p2098_p10, %p2092_p9 }
  0x73   : > { %2102 = shalt.err (!%p2099_p3)
}
  0x74   : > { %1903 = dma.hbm_to_vmem [thread:$0]  (!%p2449_p11), %s2444_s27, 64, %s2453_s9, %s367_s24  }
  0x75   : > { %s384_s5 = sand.u32 1, %s2227_s18   ;;  %s388_s13 = scalar_lea.vmem [#allocation9], %s2435_s28 }
  0x76   : > { %s395_s29 = sshll.u32 %s388_s13, 4  ;;  %s385_s30 = scalar_lea.sflag [#allocation10], %s384_s5  ;;  %s396_s29 = int_to_ptr.vmem [resolvable:$true] %s395_s29 }
  0x77   : > { %s2103_s11 = scalar_lea.hbm %s2458_s20, 64  ;;  %s2108_s6 = scalar_lea.hbm %s2762_s2, 128 }
  0x78   : > { %p2104_p4 = scmp.ne.s32.totalorder %s2458_s20, %s2103_s11  ;;  %p2109_p5 = scmp.lt.u32.totalorder %s2458_s20, %s2762_s2 }
  0x79   : > { %p2110_p7 = scmp.lt.u32.totalorder %s2108_s6, %s2103_s11  ;;  %p2112_p0 = scmp.lt.u32.totalorder %s2103_s11, %s2458_s20 }
  0x7a   : > { %p2106_p9 = pnand %p2104_p4, %p2075_p2 }
  0x7b   : > { %p2111_p12 = por %p2110_p7, %p2109_p5 }
  0x7c   : > { %p2107_p13 = pneg %p2106_p9 }
  0x7d   : > { %p2113_p1 = por %p2112_p0, %p2111_p12 }
  0x7f   : > { %p2114_p6 = pnand %p2113_p1, %p2107_p13 }
  0x81   : > { %2117 = shalt.err (!%p2114_p6)
}
  0x82   : > { %s2118_s28 = scalar_lea.vmem %s396_s29, 64  ;;  %s2234_s27 = smov [#allocation9]  }
  0x83   : > { %p2119_p10 = scmp.ne.s32.totalorder %s396_s29, %s2118_s28  ;;  %s2123_s9 = sshll.u32 %s2234_s27, 4  ;;  %s2124_s9 = int_to_ptr.vmem [resolvable:$false] %s2123_s9 }
  0x84   : > { %s2125_s24 = scalar_lea.vmem %s2124_s9, 128  ;;  %p2126_p9 = scmp.lt.s32.totalorder %s396_s29, %s2124_s9 }
  0x85   : > { %p2121_p3 = pnand %p2119_p10, %p2075_p2  ;;  %p2127_p8 = scmp.lt.s32.totalorder %s2125_s24, %s2118_s28 }
  0x87   : > { %p2122_p4 = pneg %p2121_p3  ;;  %p2128_p5 = por %p2127_p8, %p2126_p9 }
  0x89   : > { %p2129_p7 = pnand %p2128_p5, %p2122_p4 }
  0x8b   : > { %2132 = shalt.err (!%p2129_p7)
}
  0x8c   : > { %1906 = dma.hbm_to_vmem [thread:$0]  (!%p2449_p11), %s2458_s20, 64, %s396_s29, %s385_s30  }
  0x8d   : > { %p2798_p13 = scmp.ne.s32.totalorder %s2789_s23, 0 }
  0x8e   : > { %s2509_s5 = sand.u32 (!%p2798_p13), 1, %s2211_s14   ;;  %p2799_p2 = scmp.ne.s32.totalorder (!%p2798_p13), %s2786_s21, 0 }
  0x8f   : > { %404 = sbr.rel (%p2798_p13) target bundleno = 2756 (0xac4), region = 60  ;;  %s1684_s13 = sshll.u32 (!%p2798_p13), %s2509_s5, 2 }
  0x90   : > { %s407_s11 = scalar_lea.sflag (!%p2798_p13), [#allocation7], %s2509_s5  ;;  %s410_s25 = scalar_lea.vmem (!%p2798_p13), [#allocation6], %s1684_s13 }
  0x96   : > { %2186 = dma.done.wait (%p2799_p2), %s407_s11, 64  }
  0x97   : > { %2188 = vsyncadd (%p2799_p2), %s407_s11, 4294967232  ;;  %s415_s10 = sand.u32 1, %s2330_s19   ;;  %s2518_s23 = scalar_lea.vmem [#allocation9], %s1684_s13 }
  0x98   : > { %s416_s20 = scalar_lea.sflag [#allocation10], %s415_s10 }
  0x99   : > { %2190 = dma.done.wait (%p2799_p2), %s416_s20, 64  }
  0x9a   : > { %2192 = vsyncadd (%p2799_p2), %s416_s20, 4294967232  ;;  %p2800_p8 = scmp.eq.s32.totalorder %s2330_s19, 0 }
  0x9c   : > { %2194 = dma.done.wait (%p2800_p8), [#allocation10], 256   ;;  %p2801_p11 = pmov %p2800_p8 }
  0x9d   : > { %p2802_p12 = pmov %p2800_p8 }
  0x9e   : > { %2196 = vsyncadd (%p2801_p11), [#allocation10], 4294967040 }
  0x9f   : > { %2198 = dma.done.wait (%p2802_p12), [#allocation13], 256   ;;  %p2803_p0 = pmov %p2800_p8 }
  0xa0   : > { %v2235_v0 = vmov 0.0   ;;  %vm2236_vm0 = vmmov 0   ;;  %p476_p1 = scmp.lt.s32.totalorder %s2219_s16, 1  ;;  %v1977_v1 = vld [vmem:[%s2763_s3] sm:$0xff]   ;;  %v1978_v2 = vld [vmem:[%s2763_s3 + $0x8] sm:$0xff]   ;;  %vm518_vm1 = vcmask 261120   ;;  %v502_v56 = vlaneseq }
  0xa1   : > { %2200 = vsyncadd (%p2803_p0), [#allocation13], 4294967040  ;;  %1779 = vmatprep.subr.bf16.mxu0 %v2235_v0  ;;  %1783 = vmatprep.mubr.msk.bf16.mxu0 %vm2236_vm0, %v2235_v0  ;;  %v497_v3 = vld [vmem:[%s410_s25] sm:$0xf]  ;;  %v1980_v5 = vld [vmem:[%s2763_s3 + $0x8] sm:$0xff]   ;;  %vm664_vm2 = vcmask 257024  }
  0xa2   : > { %1787 = vmatprep.subr.bf16.mxu1 %v2235_v0  ;;  %1791 = vmatprep.mubr.msk.bf16.mxu1 %vm2236_vm0, %v2235_v0  ;;  %s477_s21 = scalar_select %p476_p1, %s2219_s16, 1  ;;  %v1979_v4 = vld [vmem:[%s2763_s3] sm:$0xff]   ;;  %v1985_v15 = vld [vmem:[%s2764_s4 + $0x8] sm:$0xff]   ;;  %vm596_vm3 = vcmask 64512   ;;  %vm749_vm4 = vcmask 1043456   ;;  %v2616_v57 = vshrl.u32 %v502_v56, 7 }
  0xa3   : > { %1780 = vmatpush3.bf16.msra.mxu0 %v1977_v1  ;;  %v1742_v8 = vld [vmem:[%s2768_s8] ss:$0 sm:$0xff]  ;;  %v599_v20 = vld [vmem:[%s2518_s23] sm:$0xf]  ;;  %s2237_s30 = smov 112   ;;  %s2238_s19 = smov 104  }
  0xa4   : > { %s1689_s6 = sshll.u32 %s477_s21, 3  ;;  %1781 = vmatprep.subr.bf16.mxu0 %v2235_v0  ;;  %v1984_v13 = vld [vmem:[%s2764_s4] sm:$0xff]   ;;  %s2239_s23 = smov 120   ;;  %v741_v58 = vand.u32 127, %v502_v56  ;;  %vm857_vm6 = vcmask 60416   ;;  %vm989_vm7 = vcmask 126016  }
  0xa5   : > { %s482_s9 = scalar_lea.vmem %s2760_s0, %s1689_s6  ;;  %1788 = vmatpush3.bf16.msra.mxu1 %v1984_v13  ;;  %v1693_v47 = vld [vmem:[%s2768_s8 + $0x1] ss:$0 sm:$0xff]  ;;  %s2240_s22 = smov 8   ;;  %vm1119_vm8 = vcmask 191616   ;;  %vm1251_vm9 = vcmask 257216   ;;  %vm1313_vm10 = vcmp.gt.s32.totalorder %v2616_v57, 0 }
  0xa6   : > { %v2557_v6 = vld [vmem:[%s482_s9] sm:$0xff]  ;;  %1789 = vmatprep.subr.bf16.mxu1 %v2235_v0  ;;  %vm742_vm5 = vcmp.lt.s32.totalorder %v741_v58, %v2616_v57  ;;  %s2241_s17 = smov 16   ;;  %s2242_s28 = smov 24   ;;  %vm1453_vm11 = vcmask 523264  }
  0xa7   : > { %1782 = vmatpush3.bf16.msra.mxu0 %v1978_v2  ;;  %v667_v7 = vpack.c.bf16 %v2557_v6, %v2557_v6  ;;  %s1688_s9 = sshll.u32 %s2509_s5, 3  ;;  %s1736_s10 = sshll.u32 %s2219_s16, 7 }
  0xa8   : > { %1795 = vmatprep.subr.bf16.mxu0 %v2235_v0  ;;  %s475_s20 = scalar_lea.vmem [#allocation14], %s1688_s9  ;;  %s1523_s12 = scalar_lea.sflag [#allocation8], %s2509_s5 }
  0xa9   : > { %1790 = vmatpush3.bf16.msra.mxu1 %v1985_v15  ;;  %s1537_s21 = sshll.u32 %s475_s20, 4  ;;  %p2806_p10 = scmp.ne.s32.totalorder %s2795_s26, 0  ;;  %s2712_s21 = int_to_ptr.vmem [resolvable:$true] %s1537_s21 }
  0xaa   : > { %1784 = vmatmul.mubr.msk.bf16.vlgmr.msra.gmra.mrb[0].mxu0 %vm518_vm1, %v497_v3  ;;  %1803 = vmatprep.subr.bf16.mxu1 %v2235_v0  ;;  %s2133_s6 = scalar_lea.vmem %s2712_s21, 128  ;;  %s2243_s16 = smov [#allocation14]  }
  0xab   : > { %1796 = vmatpush3.bf16.msra.mxu0 %v1979_v4  ;;  %1799 = vmatprep.mubr.msk.bf16.mxu0 %vm2236_vm0, %v2235_v0  ;;  %p2134_p6 = scmp.ne.s32.totalorder %s2712_s21, %s2133_s6 }
  0xac   : > { %1797 = vmatprep.subr.bf16.mxu0 %v2235_v0  ;;  %1792 = vmatmul.mubr.msk.bf16.vlgmr.msra.gmra.mrb[0].mxu1 %vm518_vm1, %v599_v20 }
  0xad   : > { %1805 = vmatprep.mubr.msk.bf16.mxu1 %vm2236_vm0, %v2235_v0  ;;  %p2135_p3 = pnand %p2134_p6, %p2806_p10 }
  0xaf   : > { %1798 = vmatpush3.bf16.msra.mxu0 %v1980_v5  ;;  %p2136_p4 = pneg %p2135_p3 }
  0xb0   : > { %1809 = vmatprep.subr.bf16.mxu0 %v2235_v0 }
  0xb2   : > { %1800 = vmatmul.mubr.msk.bf16.vlgmr.msra.gmra.mrb[4].mxu0 %vm518_vm1, %v667_v7 }
  0xb3   : > { %1811 = vmatprep.mubr.msk.bf16.mxu0 %vm2236_vm0, %v2235_v0 }
 0x17d   : > { %v556_v9 = vpop.f32.mrb[0].mxu0 }
 0x17e   : > { %v1785_v10 = vpop.f32.mrb[1].mxu0  ;;  %v557_v11 = vadd.f32 %v1742_v8, %v556_v9 }
 0x17f   : > { %v559_v12 = vpop.f32.mrb[2].mxu0  ;;  %v657_v48 = vpop.f32.mrb[0].mxu1 }
 0x180   : > { %v1786_v14 = vpop.f32.mrb[3].mxu0  ;;  %562 = vxpose.xlu0.b32.start.end [1/1] (short) (narrow) %v557_v11, 32  ;;  %v658_v49 = vadd.f32 %v1693_v47, %v657_v48  ;;  %v1793_v50 = vpop.f32.mrb[1].mxu1 }
 0x181   : > { %v660_v51 = vpop.f32.mrb[2].mxu1 }
 0x182   : > { %v663_v52 = vpack.c.bf16 %v658_v49, %v658_v49  ;;  %v1794_v53 = vpop.f32.mrb[3].mxu1 }
 0x184   : > { %665 = vst.msk [vmem:[#allocation3] sm:$0xf] %vm664_vm2, %v663_v52 }
 0x185   : > { %v726_v16 = vpop.f32.mrb[4].mxu0 }
 0x186   : > { %v727_v17 = vadd.f32 %v1742_v8, %v726_v16  ;;  %v1801_v18 = vpop.f32.mrb[5].mxu0 }
 0x187   : > { %v729_v19 = vpop.f32.mrb[6].mxu0 }
 0x188   : > { %v732_v21 = vmul.f32 0.35355338, %v727_v17  ;;  %v1802_v22 = vpop.f32.mrb[7].mxu0 }
 0x18a   : > { %v733_v23 = vpack.c.bf16 %v732_v21, %v732_v21 }
 0x18b   : > { %v809_v54 = vld [vmem:[#allocation3] sm:$0xf] }
 0x18c   : > { %735 = vst.msk [vmem:[#allocation4] sm:$0xf] %vm664_vm2, %v733_v23  ;;  %v814_v55 = vsel %vm749_vm4, %v809_v54, 0  ;;  %v1988_v51 = vld [vmem:[#allocation3] ss:$0 sps:$4 sm:$0xff]  }
 0x18d   : > { %1810 = vmatpush3.bf16.msra.mxu0 %v814_v55 }
 0x18e   : > { %1821 = vmatprep.subr.bf16.mxu0 %v2235_v0 }
 0x193   : > { %v1982_v24 = vld [vmem:[#allocation4] ss:$0 sps:$4 sm:$0xff]  }
 0x194   : > { %996 = vrot.lane.b32.xlu1 %v1982_v24, %s2237_s30  ;;  %v1983_v25 = vld [vmem:[#allocation4] ss:$0 sps:$4 sm:$0xff]  }
 0x195   : > { %v1981_v26 = vld [vmem:[#allocation4] ss:$0 sps:$4 sm:$0xff]  }
 0x196   : > { %v743_v37 = vld [vmem:[#allocation4] sm:$0xf] }
 0x198   : > { %1126 = vrot.lane.b32.xlu1 %v1983_v25, %s2238_s19 }
 0x1b5   : > { %864 = vrot.lane.b32.xlu0 %v1981_v26, %s2239_s23 }
 0x200   : > { %v578_v27 = vpop.trf.xlu0 }
 0x204   : > { %v579_v28 = vpop.trf.xlu0 }
 0x205   : > { %v594_v29 = vpack.c.bf16 %v579_v28, %v578_v27 }
 0x206   : > { %v997_v44 = vpop.permute.xlu1 %996 }
 0x207   : > { %597 = vst.msk [vmem:[#allocation2] sm:$0xff] %vm596_vm3, %v594_v29 }
 0x208   : > { %v580_v30 = vpop.trf.xlu0 }
 0x20a   : > { %v1127_v46 = vpop.permute.xlu1 %1126 }
 0x20c   : > { %v581_v31 = vpop.trf.xlu0 }
 0x20d   : > { %v595_v32 = vpack.c.bf16 %v581_v31, %v580_v30 }
 0x20e   : > { %v744_v33 = vld [vmem:[#allocation2] sm:$0xf]  ;;  %v860_v34 = vld [vmem:[#allocation2] sm:$0xf0] }
 0x20f   : > { %v751_v35 = vsel %vm749_vm4, %v744_v33, 0  ;;  %v867_v36 = vrot.slane %v860_v34, 4  ;;  %598 = vst.msk [vmem:[#allocation2 + $0x8] sm:$0xff] %vm596_vm3, %v595_v32  ;;  %v1986_v32 = vld [vmem:[#allocation3] ss:$0 sps:$4 sm:$0xff]  }
 0x210   : > { %1804 = vmatpush3.bf16.msra.mxu1 %v751_v35 }
 0x211   : > { %1815 = vmatprep.subr.bf16.mxu1 %v2235_v0  ;;  %v872_v38 = vsel %vm749_vm4, %v867_v36, 0 }
 0x213   : > { %1806 = vmatmul.mubr.msk.bf16.vlgmr.msra.gmra.mrb[4].mxu1 %vm596_vm3, %v743_v37 }
 0x214   : > { %1816 = vmatpush3.bf16.msra.mxu1 %v872_v38  ;;  %1817 = vmatprep.mubr.msk.bf16.mxu1 %vm2236_vm0, %v2235_v0 }
 0x215   : > { %1827 = vmatprep.subr.bf16.mxu1 %v2235_v0 }
 0x216   : > { %v992_v39 = vld [vmem:[#allocation2 + $0x8] sm:$0xf]  ;;  %v1122_v42 = vld [vmem:[#allocation2 + $0x8] sm:$0xf0] }
 0x217   : > { %v1002_v40 = vsel %vm749_vm4, %v992_v39, 0  ;;  %v1129_v43 = vrot.slane %v1122_v42, 4 }
 0x219   : > { %v1134_v45 = vsel %vm749_vm4, %v1129_v43, 0 }
 0x227   : > { %v865_v41 = vpop.permute.xlu0 %864 }
 0x228   : > { %1818 = vmatmul.mubr.msk.bf16.vlgmr.msra.gmra.mrb[8].mxu1 %vm596_vm3, %v865_v41 }
 0x229   : > { %1828 = vmatpush3.bf16.msra.mxu1 %v1002_v40  ;;  %1829 = vmatprep.mubr.msk.bf16.mxu1 %vm2236_vm0, %v2235_v0 }
 0x22a   : > { %1839 = vmatprep.subr.bf16.mxu1 %v2235_v0 }
 0x230   : > { %1830 = vmatmul.mubr.msk.bf16.vlgmr.msra.gmra.mrb[12].mxu1 %vm596_vm3, %v997_v44  ;;  %v1987_v44 = vld [vmem:[#allocation3] ss:$0 sps:$4 sm:$0xff]  }
 0x231   : > { %1840 = vmatpush3.bf16.msra.mxu1 %v1134_v45  ;;  %1841 = vmatprep.mubr.msk.bf16.mxu1 %vm2236_vm0, %v2235_v0 }
 0x232   : > { %1851 = vmatprep.subr.bf16.mxu1 %v2235_v0 }
 0x238   : > { %1842 = vmatmul.mubr.msk.bf16.vlgmr.msra.gmra.mrb[16].mxu1 %vm596_vm3, %v1127_v46 }
 0x239   : > { %1855 = vmatprep.mubr.msk.bf16.mxu1 %vm2236_vm0, %v2235_v0 }
 0x2e6   : > { %v787_v59 = vpop.f32.mrb[4].mxu1 }
 0x2e7   : > { %v793_v60 = vsel %vm742_vm5, %v787_v59, -1e+32  ;;  %v1807_v61 = vpop.f32.mrb[5].mxu1 }
 0x2e8   : > { %v790_v62 = vpop.f32.mrb[6].mxu1  ;;  %v794_v63 = vsel %vm596_vm3, %v793_v60, -inf }
 0x2e9   : > { %795 = vmax.xlane.f32.xlu1 %v794_v63  ;;  %v1808_v1 = vpop.f32.mrb[7].mxu1 }
 0x2fb   : > { %v908_v2 = vpop.f32.mrb[8].mxu1 }
 0x2fc   : > { %v914_v3 = vsel %vm742_vm5, %v908_v2, -1e+32  ;;  %v1819_v4 = vpop.f32.mrb[9].mxu1 }
 0x2fd   : > { %v915_v5 = vsel %vm596_vm3, %v914_v3, -inf  ;;  %v911_v7 = vpop.f32.mrb[10].mxu1 }
 0x2fe   : > { %916 = vmax.xlane.f32.xlu1 %v915_v5  ;;  %v1820_v8 = vpop.f32.mrb[11].mxu1 }
 0x303   : > { %v1038_v9 = vpop.f32.mrb[12].mxu1 }
 0x304   : > { %v1044_v10 = vsel %vm742_vm5, %v1038_v9, -1e+32  ;;  %v1831_v11 = vpop.f32.mrb[13].mxu1 }
 0x305   : > { %v1045_v12 = vsel %vm596_vm3, %v1044_v10, -inf  ;;  %v1041_v13 = vpop.f32.mrb[14].mxu1 }
 0x306   : > { %1046 = vmax.xlane.f32.xlu1 %v1045_v12  ;;  %v1832_v14 = vpop.f32.mrb[15].mxu1 }
 0x30b   : > { %v1170_v15 = vpop.f32.mrb[16].mxu1 }
 0x30c   : > { %v1176_v16 = vsel %vm742_vm5, %v1170_v15, -1e+32  ;;  %v1843_v17 = vpop.f32.mrb[17].mxu1 }
 0x30d   : > { %v1177_v18 = vsel %vm596_vm3, %v1176_v16, -inf  ;;  %v1173_v19 = vpop.f32.mrb[18].mxu1 }
 0x30e   : > { %1178 = vmax.xlane.f32.xlu1 %v1177_v18  ;;  %v1844_v20 = vpop.f32.mrb[19].mxu1 }
 0x376   : > { %v796_v21 = vpop.xlane.xlu1 %795 }
 0x377   : > { %v797_v22 = vsub.f32 %v793_v60, %v796_v21 }
 0x379   : > { %v798_v23 = vpack.c.bf16 %v797_v22, %v797_v22 }
 0x37b   : > { %v800_v24 = vmul.bf16 1069105081, %v798_v23  ;;  %v1989_v23 = vld [vmem:[#allocation11] sm:$0xff]  }
 0x37c   : > { %1852 = vmatpush3.bf16.msra.mxu1 %v1989_v23 }
 0x37d   : > { %1997 = vpow.bf16 %v800_v24  ;;  %1853 = vmatprep.subr.bf16.mxu1 %v2235_v0 }
 0x388   : > { %v1998_v25 = vpop.eup %1997 }
 0x389   : > { %v802_v26 = vunpack.c.l.bf16 %v1998_v25 }
 0x38b   : > { %v917_v27 = vpop.xlane.xlu1 %916  ;;  %v803_v28 = vsel %vm596_vm3, %v802_v26, 0.0 }
 0x38c   : > { %v918_v29 = vsub.f32 %v914_v3, %v917_v27  ;;  %804 = vadd.xlane.f32.xlu1 %v803_v28 }
 0x38e   : > { %v919_v30 = vpack.c.bf16 %v918_v29, %v918_v29 }
 0x390   : > { %v921_v31 = vmul.bf16 1069105081, %v919_v30 }
 0x392   : > { %1999 = vpow.bf16 %v921_v31 }
 0x393   : > { %v1047_v35 = vpop.xlane.xlu1 %1046 }
 0x394   : > { %v1048_v37 = vsub.f32 %v1044_v10, %v1047_v35 }
 0x396   : > { %v1049_v39 = vpack.c.bf16 %v1048_v37, %v1048_v37 }
 0x398   : > { %v1051_v41 = vmul.bf16 1069105081, %v1049_v39  ;;  %v1720_v39 = vld [vmem:[%s2768_s8 + $0x2] ss:$0 sm:$0xff] }
 0x39a   : > { %2001 = vpow.bf16 %v1051_v41 }
 0x39b   : > { %v1179_v38 = vpop.xlane.xlu1 %1178 }
 0x39c   : > { %v1180_v40 = vsub.f32 %v1176_v16, %v1179_v38 }
 0x39d   : > { %v2000_v33 = vpop.eup %1999  ;;  %934 = vrot.lane.b32.xlu1 %v1986_v32, %s2239_s23 }
 0x39e   : > { %v923_v34 = vunpack.c.l.bf16 %v2000_v33  ;;  %v1181_v42 = vpack.c.bf16 %v1180_v40, %v1180_v40 }
 0x3a0   : > { %v924_v36 = vsel %vm596_vm3, %v923_v34, 0.0  ;;  %v1183_v43 = vmul.bf16 1069105081, %v1181_v42 }
 0x3a1   : > { %925 = vadd.xlane.f32.xlu0 %v924_v36 }
 0x3a2   : > { %2003 = vpow.bf16 %v1183_v43 }
 0x3a5   : > { %v2002_v45 = vpop.eup %2001 }
 0x3a6   : > { %v1053_v46 = vunpack.c.l.bf16 %v2002_v45 }
 0x3a8   : > { %v1054_v48 = vsel %vm596_vm3, %v1053_v46, 0.0 }
 0x3ad   : > { %v2004_v47 = vpop.eup %2003 }
 0x3ae   : > { %v1185_v49 = vunpack.c.l.bf16 %v2004_v47 }
 0x3b0   : > { %v1186_v50 = vsel %vm596_vm3, %v1185_v49, 0.0 }
 0x3b7   : > { %1196 = vrot.lane.b32.xlu0 %v1987_v44, %s2238_s19  ;;  %s2805_s19 = sld [smem:[#allocation28_spill]] }
 0x3bd   : > { %s2710_s23 = scalar_lea.hbm %s2805_s19, %s1736_s10 }
 0x3c1   : > { %1055 = vadd.xlane.f32.xlu1 %v1054_v48 }
 0x3c5   : > { %1187 = vadd.xlane.f32.xlu1 %v1186_v50 }
 0x3d6   : > { %1064 = vrot.lane.b32.xlu1 %v1988_v51, %s2237_s30 }
 0x419   : > { %v805_v52 = vpop.xlane.xlu1 %804 }
 0x41a   : > { %2005 = vrcp.f32 %v805_v52  ;;  %v1991_v52 = vld [vmem:[#allocation12] sm:$0xff]  }
 0x41d   : > { %v935_v55 = vpop.permute.xlu1 %934 }
 0x41e   : > { %v940_v58 = vsel %vm749_vm4, %v935_v55, 0 }
 0x424   : > { %v2006_v53 = vpop.eup %2005 }
 0x425   : > { %v807_v54 = vpack.c.bf16 %v2006_v53, %v2006_v53  ;;  %v1992_v53 = vld [vmem:[#allocation12 + $0x8] sm:$0xff]  }
 0x427   : > { %v808_v56 = vmul.bf16 %v1998_v25, %v807_v54  ;;  %v1990_v25 = vld [vmem:[#allocation11 + $0x8] sm:$0xff]   ;;  %v1994_v54 = vld [vmem:[%s2767_s7 + $0x8] sm:$0xff]  }
 0x428   : > { %1854 = vmatpush3.bf16.msra.mxu1 %v1990_v25 }
 0x429   : > { %1812 = vmatmul.mubr.msk.bf16.vlgmr.msra.gmra.mrb[8].mxu0 %vm596_vm3, %v808_v56  ;;  %1867 = vmatprep.subr.bf16.mxu1 %v2235_v0 }
 0x42a   : > { %1822 = vmatpush3.bf16.msra.mxu0 %v940_v58  ;;  %1823 = vmatprep.mubr.msk.bf16.mxu0 %vm2236_vm0, %v2235_v0 }
 0x42b   : > { %1833 = vmatprep.subr.bf16.mxu0 %v2235_v0 }
 0x42e   : > { %v926_v59 = vpop.xlane.xlu0 %925 }
 0x42f   : > { %2007 = vrcp.f32 %v926_v59 }
 0x432   : > { %v1197_v7 = vpop.permute.xlu0 %1196 }
 0x433   : > { %v1202_v10 = vsel %vm749_vm4, %v1197_v7, 0 }
 0x439   : > { %v2008_v60 = vpop.eup %2007 }
 0x43a   : > { %v928_v61 = vpack.c.bf16 %v2008_v60, %v2008_v60  ;;  %v1721_v60 = vld [vmem:[%s2768_s8 + $0x3] ss:$0 sm:$0xff] }
 0x43c   : > { %v929_v62 = vmul.bf16 %v2000_v33, %v928_v61 }
 0x43e   : > { %1824 = vmatmul.mubr.msk.bf16.vlgmr.msra.gmra.mrb[12].mxu0 %vm596_vm3, %v929_v62  ;;  %v1722_v62 = vld [vmem:[%s2768_s8 + $0x4] ss:$0 sm:$0xff] }
 0x43f   : > { %1835 = vmatprep.mubr.msk.bf16.mxu0 %vm2236_vm0, %v2235_v0 }
 0x44e   : > { %v1056_v63 = vpop.xlane.xlu1 %1055 }
 0x44f   : > { %2009 = vrcp.f32 %v1056_v63 }
 0x452   : > { %v1188_v1 = vpop.xlane.xlu1 %1187 }
 0x453   : > { %2011 = vrcp.f32 %v1188_v1 }
 0x456   : > { %v1065_v2 = vpop.permute.xlu1 %1064 }
 0x457   : > { %v1070_v3 = vsel %vm749_vm4, %v1065_v2, 0 }
 0x458   : > { %1834 = vmatpush3.bf16.msra.mxu0 %v1070_v3  ;;  %v1995_v3 = vld [vmem:[%s2767_s7 + $0x10] sm:$0xff]  }
 0x459   : > { %v2010_v4 = vpop.eup %2009  ;;  %1845 = vmatprep.subr.bf16.mxu0 %v2235_v0 }
 0x45a   : > { %v1058_v5 = vpack.c.bf16 %v2010_v4, %v2010_v4  ;;  %v1996_v4 = vld [vmem:[%s2767_s7 + $0x18] sm:$0xff]  }
 0x45c   : > { %v1059_v8 = vmul.bf16 %v2002_v45, %v1058_v5 }
 0x45d   : > { %v2012_v9 = vpop.eup %2011 }
 0x45e   : > { %1836 = vmatmul.mubr.msk.bf16.vlgmr.msra.gmra.mrb[16].mxu0 %vm596_vm3, %v1059_v8  ;;  %v1190_v11 = vpack.c.bf16 %v2012_v9, %v2012_v9 }
 0x45f   : > { %1846 = vmatpush3.bf16.msra.mxu0 %v1202_v10  ;;  %1847 = vmatprep.mubr.msk.bf16.mxu0 %vm2236_vm0, %v2235_v0 }
 0x460   : > { %1859 = vmatprep.subr.bf16.mxu0 %v2235_v0  ;;  %v1191_v12 = vmul.bf16 %v2004_v47, %v1190_v11 }
 0x466   : > { %1848 = vmatmul.mubr.msk.bf16.vlgmr.msra.gmra.mrb[20].mxu0 %vm596_vm3, %v1191_v12 }
 0x467   : > { %1863 = vmatprep.mubr.msk.bf16.mxu0 %vm2236_vm0, %v2235_v0  ;;  %1860 = vmatpush3.bf16.msra.mxu0 %v1991_v52 }
 0x468   : > { %1861 = vmatprep.subr.bf16.mxu0 %v2235_v0 }
 0x46b   : > { %1862 = vmatpush3.bf16.msra.mxu0 %v1992_v53 }
 0x4fc   : > { %v850_v13 = vpop.f32.mrb[8].mxu0 }
 0x4fd   : > { %v856_v14 = vpack.c.bf16 %v850_v13, %v850_v13  ;;  %v1813_v15 = vpop.f32.mrb[9].mxu0 }
 0x4fe   : > { %v853_v16 = vpop.f32.mrb[10].mxu0 }
 0x4ff   : > { %858 = vst.msk [vmem:[#allocation5] sm:$0xf] %vm857_vm6, %v856_v14  ;;  %v1814_v17 = vpop.f32.mrb[11].mxu0 }
 0x511   : > { %v976_v18 = vpop.f32.mrb[12].mxu0 }
 0x512   : > { %v1739_v19 = vpack.c.bf16 %v976_v18, %v976_v18  ;;  %v1825_v20 = vpop.f32.mrb[13].mxu0 }
 0x513   : > { %v979_v21 = vpop.f32.mrb[14].mxu0 }
 0x514   : > { %986 = vrot.lane.b32.xlu1 %v1739_v19, %s2240_s22  ;;  %v1826_v22 = vpop.f32.mrb[15].mxu0  ;;  %s2137_s22 = sshll.u32 %s2243_s16, 4  ;;  %s2138_s22 = int_to_ptr.vmem [resolvable:$false] %s2137_s22 }
 0x515   : > { %p2140_p9 = scmp.lt.s32.totalorder %s2712_s21, %s2138_s22 }
 0x531   : > { %v1106_v24 = vpop.f32.mrb[16].mxu0 }
 0x532   : > { %v1740_v26 = vpack.c.bf16 %v1106_v24, %v1106_v24  ;;  %v1837_v27 = vpop.f32.mrb[17].mxu0 }
 0x533   : > { %v1109_v28 = vpop.f32.mrb[18].mxu0 }
 0x534   : > { %1116 = vrot.lane.b32.xlu1 %v1740_v26, %s2241_s17  ;;  %v1838_v29 = vpop.f32.mrb[19].mxu0  ;;  %s2804_s17 = sld [smem:[#allocation27_spill]] }
 0x539   : > { %v1238_v30 = vpop.f32.mrb[20].mxu0 }
 0x53a   : > { %v1741_v31 = vpack.c.bf16 %v1238_v30, %v1238_v30  ;;  %v1849_v32 = vpop.f32.mrb[21].mxu0  ;;  %v1723_v5 = vld [vmem:[%s2804_s17] ss:$0 sm:$0xff]  ;;  %v1733_v30 = vld [vmem:[%s2768_s8 + $0x6] ss:$0 sm:$0xff]  ;;  %s2139_s17 = scalar_lea.vmem %s2138_s22, 256 }
 0x53b   : > { %v1241_v33 = vpop.f32.mrb[22].mxu0  ;;  %v1734_v32 = vld [vmem:[%s2768_s8 + $0x7] ss:$0 sm:$0xff]  ;;  %p2141_p5 = scmp.lt.s32.totalorder %s2139_s17, %s2133_s6 }
 0x53c   : > { %1248 = vrot.lane.b32.xlu1 %v1741_v31, %s2242_s28  ;;  %v1850_v34 = vpop.f32.mrb[23].mxu0 }
 0x53d   : > { %p2142_p7 = por %p2141_p5, %p2140_p9 }
 0x53f   : > { %p2143_p13 = pnand %p2142_p7, %p2136_p4 }
 0x586   : > { %v987_v35 = vpop.permute.xlu1 %986 }
 0x587   : > { %990 = vst.msk [vmem:[#allocation5] sm:$0xf] %vm989_vm7, %v987_v35 }
 0x5a6   : > { %v1117_v36 = vpop.permute.xlu1 %1116 }
 0x5a7   : > { %1120 = vst.msk [vmem:[#allocation5] sm:$0xf] %vm1119_vm8, %v1117_v36 }
 0x5ae   : > { %v1249_v37 = vpop.permute.xlu1 %1248 }
 0x5af   : > { %1252 = vst.msk [vmem:[#allocation5] sm:$0xf] %vm1251_vm9, %v1249_v37 }
 0x5b6   : > { %v1253_v38 = vld [vmem:[#allocation5] sm:$0xf] }
 0x5b7   : > { %1856 = vmatmul.mubr.msk.bf16.vlgmr.msra.gmra.mrb[20].mxu1 %vm518_vm1, %v1253_v38 }
 0x5b8   : > { %1875 = vmatprep.mubr.msk.bf16.mxu1 %vm2236_vm0, %v2235_v0 }
 0x68a   : > { %v1307_v40 = vpop.f32.mrb[20].mxu1 }
 0x68b   : > { %v1316_v41 = vsel %vm1313_vm10, %v1307_v40, 0.0  ;;  %v1857_v42 = vpop.f32.mrb[21].mxu1 }
 0x68c   : > { %v1321_v43 = vadd.f32 %v1720_v39, %v1316_v41  ;;  %v1310_v44 = vpop.f32.mrb[22].mxu1 }
 0x68d   : > { %v1858_v45 = vpop.f32.mrb[23].mxu1 }
 0x68e   : > { %v1323_v46 = vadd.f32 %v1321_v43, %v2557_v6  ;;  %v1993_v6 = vld [vmem:[%s2767_s7] sm:$0xff]  }
 0x68f   : > { %1868 = vmatpush3.bf16.msra.mxu1 %v1993_v6 }
 0x690   : > { %v1324_v47 = vsel %vm518_vm1, %v1323_v46, 0.0  ;;  %1869 = vmatprep.subr.bf16.mxu1 %v2235_v0 }
 0x691   : > { %1325 = vadd.xlane.f32.xlu1 %v1324_v47 }
 0x693   : > { %1870 = vmatpush3.bf16.msra.mxu1 %v1994_v54 }
 0x694   : > { %1871 = vmatprep.subr.bf16.mxu1 %v2235_v0 }
 0x697   : > { %1872 = vmatpush3.bf16.msra.mxu1 %v1995_v3 }
 0x698   : > { %1873 = vmatprep.subr.bf16.mxu1 %v2235_v0  ;;  %v1727_v0 = vld [vmem:[%s2768_s8 + $0x5] ss:$0 sm:$0xff] }
 0x69b   : > { %1874 = vmatpush3.bf16.msra.mxu1 %v1996_v4 }
 0x71e   : > { %v1326_v48 = vpop.xlane.xlu1 %1325 }
 0x71f   : > { %v1328_v49 = vmul.f32 0.03125, %v1326_v48 }
 0x721   : > { %v1329_v50 = vsub.f32 %v1323_v46, %v1328_v49 }
 0x723   : > { %v1330_v51 = vmul.f32 %v1329_v50, %v1329_v50 }
 0x725   : > { %v1331_v57 = vsel %vm518_vm1, %v1330_v51, 0.0 }
 0x726   : > { %1332 = vadd.xlane.f32.xlu0 %v1331_v57 }
 0x7b3   : > { %v1333_v55 = vpop.xlane.xlu0 %1332 }
 0x7b4   : > { %v1334_v56 = vmul.f32 0.03125, %v1333_v55 }
 0x7b6   : > { %v1335_v58 = vadd.f32 1e-05, %v1334_v56 }
 0x7b8   : > { %2013 = vrsqrt.f32 %v1335_v58 }
 0x7c2   : > { %v2014_v59 = vpop.eup %2013 }
 0x7c3   : > { %v1337_v61 = vmul.f32 %v2014_v59, %v1329_v50 }
 0x7c5   : > { %v1342_v63 = vmul.f32 %v1721_v60, %v1337_v61 }
 0x7c7   : > { %v1347_v1 = vadd.f32 %v1722_v62, %v1342_v63 }
 0x7c9   : > { %v1348_v2 = vpack.c.bf16 %v1347_v1, %v1347_v1 }
 0x7cb   : > { %1864 = vmatmul.mubr.msk.bf16.vlgmr.msra.gmra.mrb[24].mxu0 %vm518_vm1, %v1348_v2 }
 0x89e   : > { %v1409_v7 = vpop.f32.mrb[24].mxu0 }
 0x89f   : > { %v1410_v8 = vadd.f32 %v1723_v5, %v1409_v7  ;;  %v1865_v9 = vpop.f32.mrb[25].mxu0 }
 0x8a0   : > { %v1412_v10 = vpop.f32.mrb[26].mxu0 }
 0x8a1   : > { %v1415_v11 = vmax.f32 %v1410_v8, 0.0  ;;  %v1866_v12 = vpop.f32.mrb[27].mxu0 }
 0x8a3   : > { %v1416_v13 = vpack.c.bf16 %v1415_v11, %v1415_v11 }
 0x8a5   : > { %1876 = vmatmul.mubr.msk.bf16.vlgmr.msra.gmra.mrb[24].mxu1 %vm1453_vm11, %v1416_v13 }
 0x978   : > { %v1491_v14 = vpop.f32.mrb[24].mxu1 }
 0x979   : > { %v1492_v15 = vadd.f32 %v1727_v0, %v1491_v14  ;;  %v1877_v16 = vpop.f32.mrb[25].mxu1 }
 0x97a   : > { %v1494_v17 = vpop.f32.mrb[26].mxu1 }
 0x97b   : > { %v1878_v18 = vpop.f32.mrb[27].mxu1  ;;  %v1497_v19 = vadd.f32 %v1492_v15, %v1347_v1 }
 0x97d   : > { %v1498_v20 = vsel %vm518_vm1, %v1497_v19, 0.0 }
 0x97e   : > { %1499 = vadd.xlane.f32.xlu1 %v1498_v20 }
 0xa0b   : > { %v1500_v21 = vpop.xlane.xlu1 %1499 }
 0xa0c   : > { %v1501_v22 = vmul.f32 0.03125, %v1500_v21 }
 0xa0e   : > { %v1502_v23 = vsub.f32 %v1497_v19, %v1501_v22 }
 0xa10   : > { %v1503_v24 = vmul.f32 %v1502_v23, %v1502_v23 }
 0xa12   : > { %v1504_v25 = vsel %vm518_vm1, %v1503_v24, 0.0 }
 0xa13   : > { %1505 = vadd.xlane.f32.xlu0 %v1504_v25 }
 0xaa0   : > { %v1506_v26 = vpop.xlane.xlu0 %1505 }
 0xaa1   : > { %v1507_v27 = vmul.f32 0.03125, %v1506_v26 }
 0xaa3   : > { %v1508_v28 = vadd.f32 1e-05, %v1507_v27 }
 0xaa5   : > { %2015 = vrsqrt.f32 %v1508_v28 }
 0xaaf   : > { %v2016_v29 = vpop.eup %2015 }
 0xab0   : > { %v1510_v31 = vmul.f32 %v2016_v29, %v1502_v23 }
 0xab2   : > { %v1515_v33 = vmul.f32 %v1733_v30, %v1510_v31 }
 0xab4   : > { %v1520_v34 = vadd.f32 %v1734_v32, %v1515_v33 }
 0xab6   : > { %1521 = vst.msk [vmem:[%s475_s20] sm:$0xff] %vm518_vm1, %v1520_v34 }
 0xab7   : > { %2146 = shalt.err (!%p2143_p13)
}
 0xab8   : > { %s2147_s5 = scalar_lea.hbm %s2710_s23, 128  ;;  %s2151_s9 = scalar_lea.hbm %s2805_s19, 256 }
 0xab9   : > { %p2148_p2 = scmp.ne.s32.totalorder %s2710_s23, %s2147_s5  ;;  %p2152_p12 = scmp.lt.u32.totalorder %s2710_s23, %s2805_s19 }
 0xaba   : > { %p2153_p0 = scmp.lt.u32.totalorder %s2151_s9, %s2147_s5  ;;  %p2155_p6 = scmp.lt.u32.totalorder %s2147_s5, %s2710_s23 }
 0xabb   : > { %p2149_p8 = pnand %p2148_p2, %p2806_p10 }
 0xabc   : > { %p2154_p1 = por %p2153_p0, %p2152_p12 }
 0xabd   : > { %p2150_p11 = pneg %p2149_p8 }
 0xabe   : > { %p2156_p3 = por %p2155_p6, %p2154_p1 }
 0xac0   : > { %p2157_p4 = pnand %p2156_p3, %p2150_p11 }
 0xac2   : > { %2160 = shalt.err (!%p2157_p4)
}
 0xac3   : > { %1891 = dma.vmem_to_hbm [thread:$0]  (%p2806_p10), %s2712_s21, 128, %s2710_s23, %s1523_s12  }
 0xac4 PF: > { %s2807_s11 = sld [smem:[#allocation20_spill]]  ;;  %s2808_s25 = sld [smem:[#allocation22_spill]] }
 0xac5   : > { %p2810_p5 = scmp.ge.s32.totalorder %s2227_s18, 2 }
 0xaca   : > { %s1549_s10 = sand.u32 1, %s2807_s11   ;;  %p2809_p9 = scmp.ne.s32.totalorder %s2808_s25, 0 }
 0xacb   : > { %s1550_s20 = scalar_lea.sflag [#allocation8], %s1549_s10 }
 0xacc   : > { %p1908_p7 = pnand %p2810_p5, %p2809_p9 }
 0xace   : > { %2202 = dma.done.wait (!%p1908_p7), %s1550_s20, 128  }
 0xacf   : > { %2204 = vsyncadd (!%p1908_p7), %s1550_s20, 4294967168  ;;  %s30_s18 = sadd.s32 1, %s2227_s18   ;;  %s2811_s26 = sld [smem:[#allocation24_spill]] }
 0xad0   : > { %p27_p13 = scmp.ge.s32.totalorder %s30_s18, 4   ;;  %s2812_s16 = sld [smem:[#allocation21_spill]] }
 0xad1   : > { %s2813_s17 = sld [smem:[#allocation23_spill]]  ;;  %s2814_s13 = smov %s2211_s14 }
 0xad2   : > { %s2815_s14 = smov %s2215_s15  ;;  %29 = sbr.rel (!%p27_p13) target bundleno = 14 (0xe), region = 133 }
 0xad5   : > { %s2816_s15 = smov %s2811_s26 }
 0xad9   :  { %1555 = vsyncpa [#allocation7], 1 }
 0xada   :  { %1557 = vsyncpa [#allocation7 + $0x1], 1 }
 0xadb   :  { %1558 = vsyncpa [#allocation10], 1 }
 0xadc   :  { %1560 = vsyncpa [#allocation10 + $0x1], 1 }
 0xadd   :  { %1561 = vsyncpa [#allocation13], 1 }
 0xade   :  { %1562 = vsyncpa [#allocation8], 1 }
 0xadf   :  { %1564 = vsyncpa [#allocation8 + $0x1], 1 }

</bundles_post_ra>
